<compile_context>
chip_gen: v5e
topology: v5e:2x2
jax: 0.10.0
libtpu: 0.0.40
codegen_flags: <defaults>
</compile_context>

<pallas_src>
import jax
import jax.numpy as jnp
from jax.experimental import pallas as pl
from jax.experimental.pallas import tpu as pltpu

_INV_SQRT2 = 0.7071067811865476


def _round_up(x: int, m: int) -> int:
    return ((x + m - 1) // m) * m


def _gelu_exact(h):
    # Exact erf-based GELU in f32 (matches nn.GELU default).
    return 0.5 * h * (1.0 + jax.lax.erf(h * _INV_SQRT2))


# --------------------------------------------------------------------------
# Kernels
# --------------------------------------------------------------------------
def _mlp_kernel_resident(x_ref, w1_ref, b1_ref, w2_ref, b2_ref, o_ref):
    """Weights VMEM-resident (constant index maps); single grid axis over rows."""
    h = jnp.dot(x_ref[...], w1_ref[...], preferred_element_type=jnp.float32)
    h = _gelu_exact(h + b1_ref[...])
    y = jnp.dot(h.astype(w2_ref.dtype), w2_ref[...],
                preferred_element_type=jnp.float32)
    o_ref[...] = (y + b2_ref[...]).astype(o_ref.dtype)


def _mlp_kernel_tiled_f32out(x_ref, w1_ref, b1_ref, w2_ref, b2_ref, o_ref):
    """Hidden dim tiled; the resident f32 output block is the accumulator."""
    h_idx = pl.program_id(1)
    h = jnp.dot(x_ref[...], w1_ref[...], preferred_element_type=jnp.float32)
    h = _gelu_exact(h + b1_ref[...])
    part = jnp.dot(h.astype(w2_ref.dtype), w2_ref[...],
                   preferred_element_type=jnp.float32)

    @pl.when(h_idx == 0)
    def _first():
        o_ref[...] = part + b2_ref[...]

    @pl.when(h_idx > 0)
    def _rest():
        o_ref[...] = o_ref[...] + part


def _mlp_kernel_tiled_acc(x_ref, w1_ref, b1_ref, w2_ref, b2_ref, o_ref, acc_ref):
    """Hidden dim tiled; f32 VMEM scratch accumulator, cast at the last step."""
    h_idx = pl.program_id(1)

    @pl.when(h_idx == 0)
    def _init():
        acc_ref[...] = jnp.zeros_like(acc_ref)

    h = jnp.dot(x_ref[...], w1_ref[...], preferred_element_type=jnp.float32)
    h = _gelu_exact(h + b1_ref[...])
    acc_ref[...] += jnp.dot(h.astype(w2_ref.dtype), w2_ref[...],
                            preferred_element_type=jnp.float32)

    @pl.when(h_idx == pl.num_programs(1) - 1)
    def _finalize():
        o_ref[...] = (acc_ref[...] + b2_ref[...]).astype(o_ref.dtype)


# --------------------------------------------------------------------------
# Wrapper / tiling policy
# --------------------------------------------------------------------------
def _vmem_budget():
    cap = None
    try:
        cap = getattr(pltpu.get_tpu_info(), "vmem_capacity_bytes", None)
    except Exception:
        cap = None
    if not cap or cap <= 0:
        cap = 64 << 20                       # conservative fallback (v7x per-TC)
    budget = min((int(cap) * 3) // 4, 100 << 20)   # ~48 MiB v7x, ~96 MiB v5e/v6e
    return int(cap), int(budget)


def _pick_hidden_tile(h_pad: int, target: int) -> int:
    """Largest multiple of 128 that divides h_pad and is <= target (else smallest)."""
    divisors = [c for c in range(128, h_pad + 1, 128) if h_pad % c == 0]
    fitting = [c for c in divisors if c <= target]
    return max(fitting) if fitting else min(divisors)


def prepare_mlp_params(w1, b1, w2, b2, compute_dtype=jnp.bfloat16):
    """Cast + pad the weights once, outside the per-call hot path.

    Zero padding preserves correctness: gelu(0 + 0 bias) = 0 for padded hidden
    columns, and the corresponding padded w2 rows are zero.
    """
    D, H = w1.shape
    Do = w2.shape[1]
    H_pad = _round_up(H, 128)
    Do_pad = _round_up(Do, 128)
    w1p = w1.astype(compute_dtype)
    w2p = w2.astype(compute_dtype)
    b1p = b1.astype(jnp.float32).reshape(1, H)
    b2p = b2.astype(jnp.float32).reshape(1, Do)
    if H_pad != H:
        w1p = jnp.pad(w1p, ((0, 0), (0, H_pad - H)))
        w2p = jnp.pad(w2p, ((0, H_pad - H), (0, 0)))
        b1p = jnp.pad(b1p, ((0, 0), (0, H_pad - H)))
    if Do_pad != Do:
        w2p = jnp.pad(w2p, ((0, 0), (0, Do_pad - Do)))
        b2p = jnp.pad(b2p, ((0, 0), (0, Do_pad - Do)))
    return dict(w1=w1p, b1=b1p, w2=w2p, b2=b2p, D=D, H=H, Do=Do,
                H_pad=H_pad, Do_pad=Do_pad, compute_dtype=compute_dtype)


def mlp_pallas_prepared(x, params, *, tm=None, th_target=512, force_tiled=False):
    cd = params["compute_dtype"]
    D, Do = params["D"], params["Do"]
    H_pad, Do_pad = params["H_pad"], params["Do_pad"]
    w1p, b1p, w2p, b2p = params["w1"], params["b1"], params["w2"], params["b2"]

    orig_dtype = x.dtype
    lead_shape = x.shape[:-1]
    assert x.shape[-1] == D, "input feature dim mismatch"
    M = 1
    for s in lead_shape:
        M *= s

    cd_size = jnp.dtype(cd).itemsize
    out_size = jnp.dtype(orig_dtype).itemsize
    out_is_f32 = jnp.dtype(orig_dtype) == jnp.float32

    cap, budget = _vmem_budget()
    vmem_limit = int(min(cap, budget + (8 << 20)))

    # Row tile: large enough that weight arithmetic intensity (~tm flop/byte in
    # bf16) crosses the HBM roofline; clamped so small M doesn't over-pad.
    if tm is None:
        tm = 1024 if budget >= (90 << 20) else 512
    tm = min(tm, _round_up(M, 256))
    tm = max(128, (tm // 128) * 128)

    def resident_bytes(tm_):
        return (2 * tm_ * D * cd_size              # x tile (double-buffered)
                + 2 * D * H_pad * cd_size          # w1 (budget 2x to be safe)
                + 2 * H_pad * Do_pad * cd_size     # w2
                + 2 * tm_ * Do_pad * out_size      # out tile
                + tm_ * H_pad * 4                  # f32 hidden temp
                + 4 * (H_pad + Do_pad) * 4)        # biases

    def tiled_bytes(tm_, th_):
        return (2 * tm_ * D * cd_size
                + 2 * D * th_ * cd_size
                + 2 * th_ * Do_pad * cd_size
                + 2 * tm_ * Do_pad * out_size
                + (0 if out_is_f32 else tm_ * Do_pad * 4)   # acc scratch
                + tm_ * th_ * 4                              # f32 hidden temp
                + 4 * (th_ + Do_pad) * 4)

    use_resident = (not force_tiled) and resident_bytes(tm) <= budget

    th = None
    if not use_resident:
        th = _pick_hidden_tile(H_pad, th_target)
        while tiled_bytes(tm, th) > budget and tm > 128:
            tm = max(128, tm // 2)
        while tiled_bytes(tm, th) > budget and th > 128:
            th = _pick_hidden_tile(H_pad, th // 2)

    M_pad = _round_up(M, tm)
    n_row_tiles = M_pad // tm

    x2 = x.reshape(M, D).astype(cd)
    if M_pad != M:
        # TODO(synk): a masked tail store in-kernel would avoid this pad copy.
        x2 = jnp.pad(x2, ((0, M_pad - M), (0, 0)))

    flops = 2 * M_pad * (D * H_pad + H_pad * Do_pad)
    weight_bytes = (D * H_pad + H_pad * Do_pad) * cd_size
    weight_stream = weight_bytes if use_resident else weight_bytes * n_row_tiles
    bytes_accessed = (M_pad * D * cd_size + weight_stream
                      + (H_pad + Do_pad) * 4 + M_pad * Do_pad * out_size)
    cost = pl.CostEstimate(flops=flops, transcendentals=M_pad * H_pad,
                           bytes_accessed=bytes_accessed)

    if use_resident:
        out = pl.pallas_call(
            _mlp_kernel_resident,
            out_shape=jax.ShapeDtypeStruct((M_pad, Do_pad), orig_dtype),
            grid_spec=pltpu.PrefetchScalarGridSpec(
                num_scalar_prefetch=0,
                grid=(n_row_tiles,),
                in_specs=[
                    pl.BlockSpec((tm, D), lambda i: (i, 0)),        # x rows
                    pl.BlockSpec((D, H_pad), lambda i: (0, 0)),     # w1 (resident)
                    pl.BlockSpec((1, H_pad), lambda i: (0, 0)),     # b1 (f32)
                    pl.BlockSpec((H_pad, Do_pad), lambda i: (0, 0)),  # w2 (resident)
                    pl.BlockSpec((1, Do_pad), lambda i: (0, 0)),    # b2 (f32)
                ],
                out_specs=pl.BlockSpec((tm, Do_pad), lambda i: (i, 0)),
            ),
            compiler_params=pltpu.CompilerParams(
                dimension_semantics=("parallel",),
                vmem_limit_bytes=vmem_limit),
            cost_estimate=cost,
        )(x2, w1p, b1p, w2p, b2p)
    else:
        grid = (n_row_tiles, H_pad // th)
        in_specs = [
            pl.BlockSpec((tm, D), lambda i, h: (i, 0)),
            pl.BlockSpec((D, th), lambda i, h: (0, h)),
            pl.BlockSpec((1, th), lambda i, h: (0, h)),
            pl.BlockSpec((th, Do_pad), lambda i, h: (h, 0)),
            pl.BlockSpec((1, Do_pad), lambda i, h: (0, 0)),
        ]
        out_spec = pl.BlockSpec((tm, Do_pad), lambda i, h: (i, 0))
        cparams = pltpu.CompilerParams(
            dimension_semantics=("parallel", "arbitrary"),
            vmem_limit_bytes=vmem_limit)
        if out_is_f32:
            out = pl.pallas_call(
                _mlp_kernel_tiled_f32out,
                out_shape=jax.ShapeDtypeStruct((M_pad, Do_pad), jnp.float32),
                grid_spec=pltpu.PrefetchScalarGridSpec(
                    num_scalar_prefetch=0, grid=grid,
                    in_specs=in_specs, out_specs=out_spec),
                compiler_params=cparams, cost_estimate=cost,
            )(x2, w1p, b1p, w2p, b2p)
        else:
            out = pl.pallas_call(
                _mlp_kernel_tiled_acc,
                out_shape=jax.ShapeDtypeStruct((M_pad, Do_pad), orig_dtype),
                grid_spec=pltpu.PrefetchScalarGridSpec(
                    num_scalar_prefetch=0, grid=grid,
                    in_specs=in_specs, out_specs=out_spec,
                    scratch_shapes=[pltpu.VMEM((tm, Do_pad), jnp.float32)]),
                compiler_params=cparams, cost_estimate=cost,
            )(x2, w1p, b1p, w2p, b2p)

    return out[:M, :Do].reshape(*lead_shape, Do)


def mlp_pallas(x, w1, b1, w2, b2, *, compute_dtype=jnp.bfloat16, **kwargs):
    """Convenience wrapper; for repeated calls prepare_mlp_params once and reuse."""
    params = prepare_mlp_params(w1, b1, w2, b2, compute_dtype=compute_dtype)
    return mlp_pallas_prepared(x, params, **kwargs)


# --------------------------------------------------------------------------
# References
# --------------------------------------------------------------------------
def reference_mlp(x, w1, b1, w2, b2, compute_dtype=jnp.bfloat16):
    """Matched precision: bf16 MXU operands, f32 accum/bias/GELU, cast to x.dtype."""
    cd = compute_dtype
    x2 = x.reshape(-1, x.shape[-1])
    h = jnp.dot(x2.astype(cd), w1.astype(cd),
                preferred_element_type=jnp.float32) + b1.astype(jnp.float32)
    h = 0.5 * h * (1.0 + jax.lax.erf(h * _INV_SQRT2))
    y = jnp.dot(h.astype(cd), w2.astype(cd),
                preferred_element_type=jnp.float32) + b2.astype(jnp.float32)
    return y.reshape(*x.shape[:-1], -1).astype(x.dtype)


def reference_mlp_f32(x, w1, b1, w2, b2):
    h = jnp.einsum("...d,dh->...h", x.astype(jnp.float32), w1) + b1
    h = jax.nn.gelu(h, approximate=False)
    return jnp.einsum("...h,ho->...o", h, w2) + b2


if __name__ == "__main__":
    key = jax.random.PRNGKey(0)

    def make_inputs(key, B, N, D, H, Do, x_dtype=jnp.float32):
        k_x, k_w1, k_b1, k_w2, k_b2 = jax.random.split(key, 5)
        x = jax.random.normal(k_x, (B, N, D), dtype=jnp.float32).astype(x_dtype)
        bound1 = 1.0 / (D ** 0.5)
        w1 = jax.random.uniform(k_w1, (D, H), minval=-bound1, maxval=bound1,
                                dtype=jnp.float32)
        b1 = jax.random.uniform(k_b1, (H,), minval=-bound1, maxval=bound1,
                                dtype=jnp.float32)
        bound2 = 1.0 / (H ** 0.5)
        w2 = jax.random.uniform(k_w2, (H, Do), minval=-bound2, maxval=bound2,
                                dtype=jnp.float32)
        b2 = jax.random.uniform(k_b2, (Do,), minval=-bound2, maxval=bound2,
                                dtype=jnp.float32)
        return x, w1, b1, w2, b2

    k1, k2, k3, k4, k5 = jax.random.split(key, 5)

    # Test 1: module-spec small shapes (resident fast path).
    x, w1, b1, w2, b2 = make_inputs(k1, B=2, N=8, D=32, H=128, Do=32)
    out = mlp_pallas(x, w1, b1, w2, b2)
    jax.block_until_ready(out)
    ref = reference_mlp(x, w1, b1, w2, b2)
    assert out.shape == ref.shape
    assert jnp.allclose(out, ref, atol=1e-4, rtol=1e-4), "T1 vs matched-precision ref"
    ref32 = reference_mlp_f32(x, w1, b1, w2, b2)
    assert jnp.allclose(out, ref32, atol=5e-2, rtol=5e-2), "T1 vs f32 ref"

    # Test 2: ViT-Ti-ish; exercises M padding and Do padding (192 -> 256), resident.
    x, w1, b1, w2, b2 = make_inputs(k2, B=2, N=197, D=192, H=768, Do=192)
    out = mlp_pallas(x, w1, b1, w2, b2)
    jax.block_until_ready(out)
    ref = reference_mlp(x, w1, b1, w2, b2)
    assert out.shape == ref.shape
    assert jnp.allclose(out, ref, atol=1e-4, rtol=1e-4), "T2 vs matched-precision ref"

    # Test 3: forced H-tiled path, f32 output accumulated directly in the out block.
    x, w1, b1, w2, b2 = make_inputs(k3, B=2, N=128, D=256, H=1024, Do=256)
    out = mlp_pallas(x, w1, b1, w2, b2, force_tiled=True, th_target=512)
    jax.block_until_ready(out)
    ref = reference_mlp(x, w1, b1, w2, b2)
    assert out.shape == ref.shape
    assert jnp.allclose(out, ref, atol=1e-4, rtol=1e-4), "T3 vs matched-precision ref"

    # Test 4: forced H-tiled path with bf16 in/out (VMEM scratch accumulator variant).
    x, w1, b1, w2, b2 = make_inputs(k4, B=2, N=128, D=256, H=1024, Do=256,
                                    x_dtype=jnp.bfloat16)
    out = mlp_pallas(x, w1, b1, w2, b2, force_tiled=True, th_target=512)
    jax.block_until_ready(out)
    ref = reference_mlp(x, w1, b1, w2, b2)
    assert out.shape == ref.shape
    assert jnp.allclose(out.astype(jnp.float32), ref.astype(jnp.float32),
                        atol=2e-2, rtol=2e-2), "T4 vs matched-precision ref"

    # Test 5: non-128-aligned H/Do exercise the zero-padding invariants.
    x, w1, b1, w2, b2 = make_inputs(k5, B=1, N=64, D=96, H=200, Do=100)
    out = mlp_pallas(x, w1, b1, w2, b2)
    jax.block_until_ready(out)
    ref = reference_mlp(x, w1, b1, w2, b2)
    assert out.shape == ref.shape
    assert jnp.allclose(out, ref, atol=1e-4, rtol=1e-4), "T5 vs matched-precision ref"

    # TODO(synk): nn.Dropout with p>0.0 (training mode) is not implemented; p=0.0 is identity.
    print("KERNEL_OK")
</pallas_src>

<mosaic_0001>
module attributes {stable_mosaic.version = 11 : i64} {
  func.func @_mlp_kernel_resident(%arg0: i32, %arg1: memref<256x32xbf16, #tpu.memory_space<vmem>>, %arg2: memref<32x128xbf16, #tpu.memory_space<vmem>>, %arg3: memref<1x128xf32, #tpu.memory_space<vmem>>, %arg4: memref<128x128xbf16, #tpu.memory_space<vmem>>, %arg5: memref<1x128xf32, #tpu.memory_space<vmem>>, %arg6: memref<256x128xf32, #tpu.memory_space<vmem>>) attributes {dimension_semantics = [#tpu.dimension_semantics<parallel>], iteration_bounds = array<i64: 1>, scalar_prefetch = 0 : i64, scratch_operands = 0 : i64, tpu.core_type = #tpu.core_type<tc>, window_params = [{transform_indices = @transform_0, window_bounds = array<i64: 256, 32>}, {pipeline_mode = #tpu.pipeline_mode<synchronous>, transform_indices = @transform_1, window_bounds = array<i64: 32, 128>}, {pipeline_mode = #tpu.pipeline_mode<synchronous>, transform_indices = @transform_2, window_bounds = array<i64: 1, 128>}, {pipeline_mode = #tpu.pipeline_mode<synchronous>, transform_indices = @transform_3, window_bounds = array<i64: 128, 128>}, {pipeline_mode = #tpu.pipeline_mode<synchronous>, transform_indices = @transform_4, window_bounds = array<i64: 1, 128>}, {transform_indices = @transform_5, window_bounds = array<i64: 256, 128>}]} {
    %c0 = arith.constant 0 : index
    %c0_0 = arith.constant 0 : index
    %0 = vector.load %arg1[%c0, %c0_0] : memref<256x32xbf16, #tpu.memory_space<vmem>>, vector<256x32xbf16>
    %c0_1 = arith.constant 0 : index
    %c0_2 = arith.constant 0 : index
    %1 = vector.load %arg2[%c0_1, %c0_2] : memref<32x128xbf16, #tpu.memory_space<vmem>>, vector<32x128xbf16>
    %cst = arith.constant dense<0.000000e+00> : vector<256x128xf32>
    %2 = tpu.matmul %0, %1, %cst {dimension_numbers = #tpu.dot_dimension_numbers<[1], [0], [0], [1], [0, 0, 1, 1], [], []>} : vector<256x32xbf16>, vector<32x128xbf16>, vector<256x128xf32> -> vector<256x128xf32>
    %c0_3 = arith.constant 0 : index
    %c0_4 = arith.constant 0 : index
    %3 = vector.load %arg3[%c0_3, %c0_4] : memref<1x128xf32, #tpu.memory_space<vmem>>, vector<1x128xf32>
    %4 = vector.broadcast %3 : vector<1x128xf32> to vector<256x128xf32>
    %5 = arith.addf %2, %4 : vector<256x128xf32>
    %cst_5 = arith.constant 5.000000e-01 : f32
    %6 = vector.broadcast %cst_5 : f32 to vector<256x128xf32>
    %7 = arith.mulf %6, %5 : vector<256x128xf32>
    %cst_6 = arith.constant 0.707106769 : f32
    %8 = vector.broadcast %cst_6 : f32 to vector<256x128xf32>
    %9 = arith.mulf %5, %8 : vector<256x128xf32>
    %10 = math.erf %9 : vector<256x128xf32>
    %cst_7 = arith.constant 1.000000e+00 : f32
    %11 = vector.broadcast %cst_7 : f32 to vector<256x128xf32>
    %12 = arith.addf %11, %10 : vector<256x128xf32>
    %13 = arith.mulf %7, %12 : vector<256x128xf32>
    %14 = arith.truncf %13 : vector<256x128xf32> to vector<256x128xbf16>
    %c0_8 = arith.constant 0 : index
    %c0_9 = arith.constant 0 : index
    %15 = vector.load %arg4[%c0_8, %c0_9] : memref<128x128xbf16, #tpu.memory_space<vmem>>, vector<128x128xbf16>
    %cst_10 = arith.constant dense<0.000000e+00> : vector<256x128xf32>
    %16 = tpu.matmul %14, %15, %cst_10 {dimension_numbers = #tpu.dot_dimension_numbers<[1], [0], [0], [1], [0, 0, 1, 1], [], []>} : vector<256x128xbf16>, vector<128x128xbf16>, vector<256x128xf32> -> vector<256x128xf32>
    %c0_11 = arith.constant 0 : index
    %c0_12 = arith.constant 0 : index
    %17 = vector.load %arg5[%c0_11, %c0_12] : memref<1x128xf32, #tpu.memory_space<vmem>>, vector<1x128xf32>
    %18 = vector.broadcast %17 : vector<1x128xf32> to vector<256x128xf32>
    %19 = arith.addf %16, %18 : vector<256x128xf32>
    %c0_13 = arith.constant 0 : index
    %c0_14 = arith.constant 0 : index
    %20 = vector.load %arg6[%c0_13, %c0_14] : memref<256x128xf32, #tpu.memory_space<vmem>>, vector<256x128xf32>
    tpu.vector_store %arg6[%c0_13, %c0_14], %19 {strides = array<i32>} : memref<256x128xf32, #tpu.memory_space<vmem>>, vector<256x128xf32>,
    return
  }
  func.func @transform_0(%arg0: i32) -> (i32, i32) {
    %c0_i32 = arith.constant 0 : i32
    %c0_i32_0 = arith.constant 0 : i32
    return %arg0, %c0_i32 : i32, i32
  }
  func.func @transform_1(%arg0: i32) -> (i32, i32) {
    %c0_i32 = arith.constant 0 : i32
    %c0_i32_0 = arith.constant 0 : i32
    %c0_i32_1 = arith.constant 0 : i32
    return %c0_i32, %c0_i32_0 : i32, i32
  }
  func.func @transform_2(%arg0: i32) -> (i32, i32) {
    %c0_i32 = arith.constant 0 : i32
    %c0_i32_0 = arith.constant 0 : i32
    %c0_i32_1 = arith.constant 0 : i32
    return %c0_i32, %c0_i32_0 : i32, i32
  }
  func.func @transform_3(%arg0: i32) -> (i32, i32) {
    %c0_i32 = arith.constant 0 : i32
    %c0_i32_0 = arith.constant 0 : i32
    %c0_i32_1 = arith.constant 0 : i32
    return %c0_i32, %c0_i32_0 : i32, i32
  }
  func.func @transform_4(%arg0: i32) -> (i32, i32) {
    %c0_i32 = arith.constant 0 : i32
    %c0_i32_0 = arith.constant 0 : i32
    %c0_i32_1 = arith.constant 0 : i32
    return %c0_i32, %c0_i32_0 : i32, i32
  }
  func.func @transform_5(%arg0: i32) -> (i32, i32) {
    %c0_i32 = arith.constant 0 : i32
    %c0_i32_0 = arith.constant 0 : i32
    return %arg0, %c0_i32 : i32, i32
  }
}

</mosaic_0001>

<bundles_post_ra>
// kernel: tpu_custom_call.1
= control target key start
LH: loop header
LB: loop body
LE: loop exit
PB: predicated region body
PF: predicated region fallthrough
CT: control target
= control target key end

     0   :  { %s3685_s0 = inlined_call_operand.vmem [shape: bf16[256,32], index: 0, kind: input, shape index: {}]   ;;  %s3686_s1 = inlined_call_operand.vmem [shape: bf16[32,128], index: 1, kind: input, shape index: {}]   ;;  %s3687_s2 = inlined_call_operand.vmem [shape: f32[1,128], index: 2, kind: input, shape index: {}]   ;;  %s3688_s3 = inlined_call_operand.vmem [shape: bf16[128,128], index: 3, kind: input, shape index: {}]   ;;  %s3689_s4 = inlined_call_operand.vmem [shape: f32[1,128], index: 4, kind: input, shape index: {}]   ;;  %s3690_s5 = inlined_call_operand.hbm [shape: f32[256,128], index: 5, kind: output, shape index: {}]  }
   0x1   :  { %v2092_v0 = vld [vmem:[%s3686_s1 + $0x8] sm:$0xff]  ;;  %v2091_v1 = vld [vmem:[%s3686_s1] sm:$0xff] }
   0x2   :  { %209 = vmatpush.bf16.msra.mxu0 %v2092_v0  ;;  %2101 = vmatpush.bf16.msra.mxu3 %v2092_v0 }
   0x3   :  { %10 = vsyncpa [#allocation3], 0  ;;  %v2075_v2 = vld [vmem:[%s3685_s0] sm:$0xff]  ;;  %vm154_vm0 = vcmask 261120   ;;  %v2076_v3 = vld [vmem:[%s3685_s0 + $0x8] sm:$0xff]  ;;  %s1911_s1 = sshll.u32 %s3690_s5, 4  ;;  %s1912_s1 = int_to_ptr.hbm [resolvable:$true] %s1911_s1 }
   0x4   :  { %v2077_v4 = vld [vmem:[%s3685_s0 + $0x10] sm:$0xff]  ;;  %v2078_v5 = vld [vmem:[%s3685_s0 + $0x18] sm:$0xff]  ;;  %v2084_v6 = vld [vmem:[%s3685_s0 + $0x48] sm:$0xff]  ;;  %s2210_s28 = smov 128   ;;  %s2211_s29 = smov 8  }
   0x5   :  { %v2079_v7 = vld [vmem:[%s3685_s0 + $0x20] sm:$0xff]  ;;  %v2085_v8 = vld [vmem:[%s3685_s0 + $0x50] sm:$0xff]  ;;  %v2080_v9 = vld [vmem:[%s3685_s0 + $0x28] sm:$0xff] }
   0x6   :  { %210 = vmatpush.bf16.msra.mxu0 %v2091_v1  ;;  %2102 = vmatpush.bf16.msra.mxu3 %v2091_v1  ;;  %v2086_v10 = vld [vmem:[%s3685_s0 + $0x58] sm:$0xff]  ;;  %v2081_v11 = vld [vmem:[%s3685_s0 + $0x30] sm:$0xff]  ;;  %v2087_v12 = vld [vmem:[%s3685_s0 + $0x60] sm:$0xff] }
   0x7   :  { %v2082_v13 = vld [vmem:[%s3685_s0 + $0x38] sm:$0xff]  ;;  %v2088_v14 = vld [vmem:[%s3685_s0 + $0x68] sm:$0xff]  ;;  %v2303_v15 = vld [vmem:[%s3687_s2] ss:$0 sm:$0xff] }
   0x8   :  { %v2083_v16 = vld [vmem:[%s3685_s0 + $0x40] sm:$0xff]  ;;  %v2100_v18 = vld [vmem:[%s3688_s3 + $0x38] sm:$0xff]  ;;  %v2099_v21 = vld [vmem:[%s3688_s3 + $0x30] sm:$0xff] }
   0x9   :  { %1995 = vmatmul.msk.bf16.vlgmr.msra.gmra.mxu0 %vm154_vm0, %v2075_v2  ;;  %2004 = vmatmul.msk.bf16.vlgmr.msra.gmra.mxu3 %vm154_vm0, %v2084_v6  ;;  %v2089_v23 = vld [vmem:[%s3685_s0 + $0x70] sm:$0xff]  ;;  %v2098_v26 = vld [vmem:[%s3688_s3 + $0x28] sm:$0xff]  ;;  %v2097_v32 = vld [vmem:[%s3688_s3 + $0x20] sm:$0xff] }
   0xa   :  { %1784 = vmatpush.bf16.msra.mxu1 %v2100_v18  ;;  %2103 = vmatpush.bf16.msra.mxu2 %v2100_v18  ;;  %v2096_v39 = vld [vmem:[%s3688_s3 + $0x18] sm:$0xff]  ;;  %v2095_v48 = vld [vmem:[%s3688_s3 + $0x10] sm:$0xff]  ;;  %v2094_v59 = vld [vmem:[%s3688_s3 + $0x8] sm:$0xff] }
   0xb   :  { %v2090_v51 = vld [vmem:[%s3685_s0 + $0x78] sm:$0xff] }
   0xe   :  { %1785 = vmatpush.bf16.msra.mxu1 %v2099_v21  ;;  %2104 = vmatpush.bf16.msra.mxu2 %v2099_v21 }
  0x12   :  { %1786 = vmatpush.bf16.msra.mxu1 %v2098_v26  ;;  %2105 = vmatpush.bf16.msra.mxu2 %v2098_v26 }
  0x16   :  { %1787 = vmatpush.bf16.msra.mxu1 %v2097_v32  ;;  %2106 = vmatpush.bf16.msra.mxu2 %v2097_v32 }
  0x19   :  { %1996 = vmatmul.msk.bf16.gmra.mxu0 %vm154_vm0, %v2076_v3  ;;  %2005 = vmatmul.msk.bf16.gmra.mxu3 %vm154_vm0, %v2085_v8 }
  0x1a   :  { %1788 = vmatpush.bf16.msra.mxu1 %v2096_v39  ;;  %2107 = vmatpush.bf16.msra.mxu2 %v2096_v39 }
  0x1e   :  { %1789 = vmatpush.bf16.msra.mxu1 %v2095_v48  ;;  %2108 = vmatpush.bf16.msra.mxu2 %v2095_v48 }
  0x22   :  { %1790 = vmatpush.bf16.msra.mxu1 %v2094_v59  ;;  %2109 = vmatpush.bf16.msra.mxu2 %v2094_v59 }
  0x29   :  { %1997 = vmatmul.msk.bf16.gmra.mxu0 %vm154_vm0, %v2077_v4  ;;  %2006 = vmatmul.msk.bf16.gmra.mxu3 %vm154_vm0, %v2086_v10 }
  0x39   :  { %1998 = vmatmul.msk.bf16.gmra.mxu0 %vm154_vm0, %v2078_v5  ;;  %2007 = vmatmul.msk.bf16.gmra.mxu3 %vm154_vm0, %v2087_v12  ;;  %v2093_v5 = vld [vmem:[%s3688_s3] sm:$0xff] }
  0x3a   :  { %1791 = vmatpush.bf16.msra.mxu1 %v2093_v5  ;;  %2110 = vmatpush.bf16.msra.mxu2 %v2093_v5 }
  0x49   :  { %1999 = vmatmul.msk.bf16.gmra.mxu0 %vm154_vm0, %v2079_v7  ;;  %2008 = vmatmul.msk.bf16.gmra.mxu3 %vm154_vm0, %v2088_v14 }
  0x59   :  { %2000 = vmatmul.msk.bf16.gmra.mxu0 %vm154_vm0, %v2080_v9  ;;  %2009 = vmatmul.msk.bf16.gmra.mxu3 %vm154_vm0, %v2089_v23 }
  0x69   :  { %2001 = vmatmul.msk.bf16.gmra.mxu0 %vm154_vm0, %v2081_v11  ;;  %2010 = vmatmul.msk.bf16.gmra.mxu3 %vm154_vm0, %v2090_v51 }
  0x79   :  { %2002 = vmatmul.msk.bf16.gmra.mxu0 %vm154_vm0, %v2082_v13 }
  0x86   :  { %v212_v17 = vpop.f32.mrf.mxu0 }
  0x87   :  { %v2312_v19 = vadd.f32 %v2303_v15, %v212_v17 }
  0x89   :  { %v2315_v20 = vmul.f32 0.70710677, %v2312_v19  ;;  %2003 = vmatmul.msk.bf16.gmra.mxu0 %vm154_vm0, %v2083_v16 }
  0x8b   :  { %v356_v22 = vmul.f32 %v2315_v20, %v2315_v20 }
  0x8d   :  { %v2326_v24 = vmin.f32 %v356_v22, 16.0 }
  0x8e   :  { %v214_v25 = vpop.f32.mrf.mxu0 }
  0x8f   :  { %v358_v27 = vmul.f32 2.1237322e-06, %v2326_v24  ;;  %v2334_v28 = vadd.f32 %v2303_v15, %v214_v25  ;;  %v369_v29 = vmul.f32 3.8918573e-05, %v2326_v24 }
  0x91   :  { %v359_v30 = vadd.f32 0.00028619796, %v358_v27  ;;  %v2338_v31 = vmul.f32 0.70710677, %v2334_v28  ;;  %v370_v33 = vadd.f32 0.001143296, %v369_v29 }
  0x93   :  { %v396_v34 = vmul.f32 %v2338_v31, %v2338_v31  ;;  %v371_v35 = vmul.f32 %v370_v33, %v2326_v24  ;;  %v360_v36 = vmul.f32 %v359_v30, %v2326_v24 }
  0x95   :  { %v2347_v37 = vmin.f32 %v396_v34, 16.0  ;;  %v372_v40 = vadd.f32 0.014752088, %v371_v35  ;;  %v361_v45 = vadd.f32 0.0036580483, %v360_v36 }
  0x96   :  { %v217_v38 = vpop.f32.mrf.mxu0 }
  0x97   :  { %v398_v41 = vmul.f32 2.1237322e-06, %v2347_v37  ;;  %v2354_v42 = vadd.f32 %v2303_v15, %v217_v38  ;;  %v409_v43 = vmul.f32 3.8918573e-05, %v2347_v37  ;;  %v373_v44 = vmul.f32 %v372_v40, %v2326_v24 }
  0x98   :  { %v362_v56 = vmul.f32 %v361_v45, %v2326_v24 }
  0x99   :  { %v399_v46 = vadd.f32 0.00028619796, %v398_v41  ;;  %v2359_v47 = vmul.f32 0.70710677, %v2354_v42  ;;  %v374_v49 = vadd.f32 0.112945676, %v373_v44 }
  0x9a   :  { %v410_v52 = vadd.f32 0.001143296, %v409_v43  ;;  %v363_v3 = vadd.f32 0.05243302, %v362_v56 }
  0x9b   :  { %v400_v50 = vmul.f32 %v399_v46, %v2347_v37  ;;  %v436_v53 = vmul.f32 %v2359_v47, %v2359_v47  ;;  %v375_v54 = vmul.f32 %v374_v49, %v2326_v24 }
  0x9c   :  { %v411_v55 = vmul.f32 %v410_v52, %v2347_v37  ;;  %v364_v12 = vmul.f32 %v363_v3, %v2326_v24 }
  0x9d   :  { %v2374_v57 = vmin.f32 %v436_v53, 16.0  ;;  %v376_v60 = vadd.f32 0.4994258, %v375_v54  ;;  %v401_v61 = vadd.f32 0.0036580483, %v400_v50 }
  0x9e   :  { %v219_v58 = vpop.f32.mrf.mxu0  ;;  %v412_v63 = vadd.f32 0.014752088, %v411_v55  ;;  %v365_v25 = vadd.f32 0.18741608, %v364_v12  ;;  %v293_v55 = vmul.f32 0.5, %v2334_v28 }
  0x9f   :  { %v2380_v62 = vadd.f32 %v2303_v15, %v219_v58  ;;  %v377_v0 = vmul.f32 %v376_v60, %v2326_v24  ;;  %v449_v1 = vmul.f32 3.8918573e-05, %v2374_v57  ;;  %v402_v7 = vmul.f32 %v401_v61, %v2347_v37 }
  0xa0   :  { %v413_v2 = vmul.f32 %v412_v63, %v2347_v37  ;;  %v438_v17 = vmul.f32 2.1237322e-06, %v2374_v57  ;;  %v366_v39 = vmul.f32 %v365_v25, %v2326_v24 }
  0xa1   :  { %v2386_v4 = vmul.f32 0.70710677, %v2380_v62  ;;  %v378_v6 = vadd.f32 1.0, %v377_v0  ;;  %v450_v9 = vadd.f32 0.001143296, %v449_v1 }
  0xa2   :  { %v414_v8 = vadd.f32 0.112945676, %v413_v2  ;;  %v403_v16 = vadd.f32 0.05243302, %v402_v7  ;;  %v439_v30 = vadd.f32 0.00028619796, %v438_v17 }
  0xa3   :  { %v476_v10 = vmul.f32 %v2386_v4, %v2386_v4  ;;  %2116 = vrcp.f32 %v378_v6  ;;  %v451_v14 = vmul.f32 %v450_v9, %v2374_v57  ;;  %v390_v51 = vand.u32 2147483648, %v378_v6 }
  0xa4   :  { %v415_v11 = vmul.f32 %v414_v8, %v2347_v37  ;;  %v404_v29 = vmul.f32 %v403_v16, %v2347_v37  ;;  %v440_v43 = vmul.f32 %v439_v30, %v2374_v57  ;;  %vm384_vm2 = vweird.f32 %v378_v6 }
  0xa5   :  { %v2398_v18 = vmin.f32 %v476_v10, 16.0  ;;  %v452_v22 = vadd.f32 0.014752088, %v451_v14  ;;  %v388_v24 = vand.u32 2147483647, %v378_v6  ;;  %v391_v0 = vor.u32 1.1754944e-38, %v390_v51 }
  0xa6   :  { %v222_v13 = vpop.f32.mrf.mxu0  ;;  %v416_v21 = vadd.f32 0.4994258, %v415_v11  ;;  %v405_v41 = vadd.f32 0.18741608, %v404_v29  ;;  %v367_v52 = vadd.f32 1.1283791, %v366_v39 }
  0xa7   :  { %v453_v27 = vmul.f32 %v452_v22, %v2374_v57  ;;  %v2404_v32 = vadd.f32 %v2303_v15, %v222_v13  ;;  %v478_v34 = vmul.f32 2.1237322e-06, %v2398_v18  ;;  %v489_v49 = vmul.f32 3.8918573e-05, %v2398_v18 }
  0xa8   :  { %v417_v26 = vmul.f32 %v416_v21, %v2347_v37  ;;  %v441_v53 = vadd.f32 0.0036580483, %v440_v43  ;;  %v406_v59 = vmul.f32 %v405_v41, %v2347_v37  ;;  %vm389_vm4 = vcmp.eq.f32.partialorder %v388_v24, 8.507059e+37 }
  0xa9   :  { %v2117_v23 = vpop.eup %2116  ;;  %v454_v36 = vadd.f32 0.112945676, %v453_v27  ;;  %v2413_v44 = vmul.f32 0.70710677, %v2404_v32  ;;  %v479_v46 = vadd.f32 0.00028619796, %v478_v34 }
  0xaa   :  { %v380_v33 = vmul.f32 %v2117_v23, %v378_v6  ;;  %v2407_v35 = vadd.f32 1.0, %v417_v26  ;;  %vm385_vm1 = vweird.f32 %v2117_v23  ;;  %v490_v63 = vadd.f32 0.001143296, %v489_v49 }
  0xab   :  { %v455_v48 = vmul.f32 %v454_v36, %v2374_v57  ;;  %v516_v54 = vmul.f32 %v2413_v44, %v2413_v44  ;;  %vm2419_vm3 = vmor %vm384_vm2, %vm385_vm1  ;;  %v480_v60 = vmul.f32 %v479_v46, %v2398_v18  ;;  %v368_v6 = vmul.f32 %v367_v52, %v2315_v20 }
  0xac   :  { %v381_v38 = vsub.f32 1.0, %v380_v33  ;;  %2118 = vrcp.f32 %v2407_v35  ;;  %v491_v5 = vmul.f32 %v490_v63, %v2398_v18  ;;  %v442_v7 = vmul.f32 %v441_v53, %v2374_v57 }
  0xad   :  { %v456_v56 = vadd.f32 0.4994258, %v455_v48  ;;  %v2432_v37 = vmin.f32 %v516_v54, 16.0  ;;  %v407_v9 = vadd.f32 1.1283791, %v406_v59  ;;  %v430_v16 = vand.u32 2147483648, %v2407_v35 }
  0xae   :  { %v224_v40 = vpop.f32.mrf.mxu0  ;;  %v382_v45 = vmul.f32 %v2117_v23, %v381_v38  ;;  %v481_v10 = vadd.f32 0.0036580483, %v480_v60  ;;  %v428_v14 = vand.u32 2147483647, %v2407_v35  ;;  %v492_v17 = vadd.f32 0.014752088, %v491_v5 }
  0xaf   :  { %v457_v3 = vmul.f32 %v456_v56, %v2374_v57  ;;  %v2437_v13 = vadd.f32 %v2303_v15, %v224_v40  ;;  %v518_v22 = vmul.f32 2.1237322e-06, %v2432_v37  ;;  %v443_v25 = vadd.f32 0.05243302, %v442_v7 }
  0xb0   :  { %v383_v50 = vadd.f32 %v2117_v23, %v382_v45  ;;  %vm424_vm6 = vweird.f32 %v2407_v35  ;;  %v408_v27 = vmul.f32 %v407_v9, %v2338_v31  ;;  %v431_v30 = vor.u32 1.1754944e-38, %v430_v16 }
  0xb1   :  { %v2434_v12 = vadd.f32 1.0, %v457_v3  ;;  %v2449_v29 = vmul.f32 0.70710677, %v2437_v13  ;;  %v493_v33 = vmul.f32 %v492_v17, %v2398_v18  ;;  %v482_v34 = vmul.f32 %v481_v10, %v2398_v18 }
  0xb2   :  { %v2119_v58 = vpop.eup %2118  ;;  %v387_v61 = vsel %vm2419_vm3, %v2117_v23, %v383_v50  ;;  %vm429_vm8 = vcmp.eq.f32.partialorder %v428_v14, 8.507059e+37  ;;  %v519_v40 = vadd.f32 0.00028619796, %v518_v22  ;;  %v444_v31 = vmul.f32 %v443_v25, %v2374_v57 }
  0xb3   :  { %v420_v1 = vmul.f32 %v2119_v58, %v2407_v35  ;;  %v392_v8 = vsel %vm389_vm4, %v391_v0, %v387_v61  ;;  %vm425_vm5 = vweird.f32 %v2119_v58  ;;  %2120 = vrcp.f32 %v2434_v12 }
  0xb4   :  { %v393_v21 = vmul.f32 %v392_v8, %v368_v6  ;;  %vm426_vm7 = vmor %vm424_vm6, %vm425_vm5  ;;  %v494_v46 = vadd.f32 0.112945676, %v493_v33  ;;  %v529_v48 = vmul.f32 3.8918573e-05, %v2432_v37  ;;  %v556_v49 = vmul.f32 %v2449_v29, %v2449_v29 }
  0xb5   :  { %v421_v11 = vsub.f32 1.0, %v420_v1  ;;  %v292_v24 = vmul.f32 0.5, %v2312_v19  ;;  %v483_v52 = vadd.f32 0.05243302, %v482_v34  ;;  %v520_v56 = vmul.f32 %v519_v40, %v2432_v37 }
  0xb6   :  { %v227_v2 = vpop.f32.mrf.mxu0  ;;  %v2011_v38 = vclamps-f32 %v393_v21, 1.0  ;;  %v495_v59 = vmul.f32 %v494_v46, %v2398_v18  ;;  %v445_v60 = vadd.f32 0.18741608, %v444_v31  ;;  %v530_v0 = vadd.f32 0.001143296, %v529_v48 }
  0xb7   :  { %v422_v20 = vmul.f32 %v2119_v58, %v421_v11  ;;  %v2444_v23 = vadd.f32 %v2303_v15, %v227_v2  ;;  %v2473_v1 = vmin.f32 %v556_v49, 16.0  ;;  %v484_v3 = vmul.f32 %v483_v52, %v2398_v18 }
  0xb8   :  { %v1636_v54 = vadd.f32 1.0, %v2011_v38  ;;  %v496_v2 = vadd.f32 0.4994258, %v495_v59  ;;  %v531_v7 = vmul.f32 %v530_v0, %v2432_v37  ;;  %v521_v8 = vadd.f32 0.0036580483, %v520_v56 }
  0xb9   :  { %v423_v26 = vadd.f32 %v2119_v58, %v422_v20  ;;  %v2454_v41 = vmul.f32 0.70710677, %v2444_v23  ;;  %v2456_v43 = vpop.eup %2120  ;;  %v558_v21 = vmul.f32 2.1237322e-06, %v2473_v1  ;;  %v446_v25 = vmul.f32 %v445_v60, %v2374_v57 }
  0xba   :  { %v460_v51 = vmul.f32 %v2456_v43, %v2434_v12  ;;  %v1668_v5 = vmul.f32 %v1636_v54, %v292_v24  ;;  %v497_v11 = vmul.f32 %v496_v2, %v2398_v18  ;;  %v532_v17 = vadd.f32 0.014752088, %v531_v7 }
  0xbb   :  { %v427_v39 = vsel %vm426_vm7, %v2119_v58, %v423_v26  ;;  %v596_v58 = vmul.f32 %v2454_v41, %v2454_v41  ;;  %vm465_vm9 = vweird.f32 %v2456_v43  ;;  %v559_v57 = vadd.f32 0.00028619796, %v558_v21 }
  0xbc   :  { %v432_v35 = vsel %vm429_vm8, %v431_v30, %v427_v39  ;;  %v461_v63 = vsub.f32 1.0, %v460_v51  ;;  %v2494_v26 = vadd.f32 1.0, %v497_v11  ;;  %v522_v30 = vmul.f32 %v521_v8, %v2432_v37 }
  0xbd   :  { %v433_v45 = vmul.f32 %v432_v35, %v408_v27  ;;  %v2480_v9 = vmin.f32 %v596_v58, 16.0  ;;  %v485_v27 = vadd.f32 0.18741608, %v484_v3  ;;  %v533_v34 = vmul.f32 %v532_v17, %v2432_v37 }
  0xbe   :  { %v229_v36 = vpop.f32.mrf.mxu0  ;;  %v462_v16 = vmul.f32 %v2456_v43, %v461_v63  ;;  %2122 = vrcp.f32 %v2494_v26  ;;  %v470_v40 = vand.u32 2147483648, %v2434_v12  ;;  %v447_v35 = vadd.f32 1.1283791, %v446_v25 }
  0xbf   :  { %v2463_v50 = vadd.f32 %v2303_v15, %v229_v36  ;;  %v2012_v53 = vclamps-f32 %v433_v45, 1.0  ;;  %v598_v33 = vmul.f32 2.1237322e-06, %v2480_v9  ;;  %vm464_vm10 = vweird.f32 %v2434_v12 }
  0xc0   :  { %v463_v38 = vadd.f32 %v2456_v43, %v462_v16  ;;  %v468_v45 = vand.u32 2147483647, %v2434_v12  ;;  %v534_v46 = vadd.f32 0.112945676, %v533_v34  ;;  %v486_v48 = vmul.f32 %v485_v27, %v2398_v18  ;;  %vm466_vm11 = vmor %vm464_vm10, %vm465_vm9 }
  0xc1   :  { %v1637_v61 = vadd.f32 1.0, %v2012_v53  ;;  %v2476_v19 = vmul.f32 0.70710677, %v2463_v50  ;;  %v523_v49 = vadd.f32 0.05243302, %v522_v30  ;;  %v471_v18 = vor.u32 1.1754944e-38, %v470_v40 }
  0xc2   :  { %v599_v24 = vadd.f32 0.00028619796, %v598_v33  ;;  %v467_v53 = vsel %vm466_vm11, %v2456_v43, %v463_v38  ;;  %v535_v54 = vmul.f32 %v534_v46, %v2432_v37  ;;  %v448_v59 = vmul.f32 %v447_v35, %v2359_v47 }
  0xc3   :  { %v1669_v6 = vmul.f32 %v1637_v61, %v293_v55  ;;  %v636_v20 = vmul.f32 %v2476_v19, %v2476_v19  ;;  %v560_v55 = vmul.f32 %v559_v57, %v2473_v1  ;;  %vm469_vm12 = vcmp.eq.f32.partialorder %v468_v45, 8.507059e+37 }
  0xc4   :  { %v2123_v58 = vpop.eup %2122  ;;  %v536_v60 = vadd.f32 0.4994258, %v535_v54  ;;  %v472_v63 = vsel %vm469_vm12, %v471_v18, %v467_v53  ;;  %v569_v0 = vmul.f32 3.8918573e-05, %v2473_v1  ;;  %v487_v2 = vadd.f32 1.1283791, %v486_v48 }
  0xc5   :  { %v1700_v14 = vpack.c.bf16 %v1669_v6, %v1668_v5  ;;  %v2504_v39 = vmin.f32 %v636_v20, 16.0  ;;  %v500_v43 = vmul.f32 %v2123_v58, %v2494_v26  ;;  %v600_v3 = vmul.f32 %v599_v24, %v2480_v9 }
  0xc6   :  { %v232_v28 = vpop.f32.mrf.mxu0  ;;  %v537_v5 = vmul.f32 %v536_v60, %v2432_v37  ;;  %v524_v6 = vmul.f32 %v523_v49, %v2432_v37  ;;  %v561_v47 = vadd.f32 0.0036580483, %v560_v55  ;;  %v473_v16 = vmul.f32 %v472_v63, %v448_v59 }
  0xc7   :  { %v2483_v10 = vadd.f32 %v2303_v15, %v232_v28  ;;  %1792 = vmatmul.bf16.vlgmr.msra.gmra.mxu1 %v1700_v14  ;;  %v638_v56 = vmul.f32 2.1237322e-06, %v2504_v39  ;;  %v501_v8 = vsub.f32 1.0, %v500_v43  ;;  %v508_v17 = vand.u32 2147483647, %v2494_v26 }
  0xc8   :  { %v510_v21 = vand.u32 2147483648, %v2494_v26  ;;  %vm505_vm13 = vweird.f32 %v2123_v58  ;;  %v570_v27 = vadd.f32 0.001143296, %v569_v0  ;;  %v488_v30 = vmul.f32 %v487_v2, %v2386_v4  ;;  %v257_v4 = vpop.f32.mrf.mxu3 }
  0xc9   :  { %v2491_v22 = vmul.f32 0.70710677, %v2483_v10  ;;  %v639_v7 = vadd.f32 0.00028619796, %v638_v56  ;;  %v502_v25 = vmul.f32 %v2123_v58, %v501_v8  ;;  %v601_v33 = vadd.f32 0.0036580483, %v600_v3 }
  0xca   :  { %v562_v38 = vmul.f32 %v561_v47, %v2473_v1  ;;  %vm504_vm14 = vweird.f32 %v2494_v26  ;;  %v2013_v45 = vclamps-f32 %v473_v16, 1.0  ;;  %v511_v46 = vor.u32 1.1754944e-38, %v510_v21 }
  0xcb   :  { %v676_v36 = vmul.f32 %v2491_v22, %v2491_v22  ;;  %v640_v57 = vmul.f32 %v639_v7, %v2504_v39  ;;  %v503_v40 = vadd.f32 %v2123_v58, %v502_v25  ;;  %vm506_vm15 = vmor %vm504_vm14, %vm505_vm13  ;;  %vm509_vm0 = vcmp.eq.f32.partialorder %v508_v17, 8.507059e+37 }
  0xcc   :  { %v2549_v49 = vadd.f32 %v2303_v15, %v257_v4  ;;  %v571_v24 = vmul.f32 %v570_v27, %v2473_v1  ;;  %v602_v53 = vmul.f32 %v601_v33, %v2480_v9  ;;  %v563_v55 = vadd.f32 0.05243302, %v562_v38 }
  0xcd   :  { %v2513_v52 = vmin.f32 %v676_v36, 16.0  ;;  %v2539_v36 = vadd.f32 1.0, %v537_v5  ;;  %v507_v48 = vsel %vm506_vm15, %v2123_v58, %v503_v40  ;;  %v641_v56 = vadd.f32 0.0036580483, %v640_v57 }
  0xce   :  { %v234_v31 = vpop.f32.mrf.mxu0  ;;  %v512_v54 = vsel %vm509_vm0, %v511_v46, %v507_v48  ;;  %v1638_v60 = vadd.f32 1.0, %v2013_v45  ;;  %v609_v63 = vmul.f32 3.8918573e-05, %v2480_v9  ;;  %v2562_v2 = vmul.f32 0.70710677, %v2549_v49 }
  0xcf   :  { %v2511_v51 = vadd.f32 %v2303_v15, %v234_v31  ;;  %v678_v28 = vmul.f32 2.1237322e-06, %v2513_v52  ;;  %2124 = vrcp.f32 %v2539_v36  ;;  %v513_v59 = vmul.f32 %v512_v54, %v488_v30 }
  0xd0   :  { %v572_v3 = vadd.f32 0.014752088, %v571_v24  ;;  %v295_v5 = vmul.f32 0.5, %v2380_v62  ;;  %v603_v47 = vadd.f32 0.05243302, %v602_v53  ;;  %v642_v25 = vmul.f32 %v641_v56, %v2504_v39 }
  0xd1   :  { %v2520_v12 = vmul.f32 0.70710677, %v2511_v51  ;;  %v679_v34 = vadd.f32 0.00028619796, %v678_v28  ;;  %v2014_v43 = vclamps-f32 %v513_v59, 1.0  ;;  %v294_v28 = vmul.f32 0.5, %v2354_v42 }
  0xd2   :  { %v525_v8 = vadd.f32 0.18741608, %v524_v6  ;;  %v610_v33 = vadd.f32 0.001143296, %v609_v63  ;;  %v1076_v6 = vmul.f32 %v2562_v2, %v2562_v2  ;;  %v604_v38 = vmul.f32 %v603_v47, %v2480_v9 }
  0xd3   :  { %v716_v61 = vmul.f32 %v2520_v12, %v2520_v12  ;;  %v680_v26 = vmul.f32 %v679_v34, %v2513_v52  ;;  %v1639_v17 = vadd.f32 1.0, %v2014_v43  ;;  %v1670_v27 = vmul.f32 %v1638_v60, %v294_v28 }
  0xd4   :  { %v573_v34 = vmul.f32 %v572_v3, %v2473_v1  ;;  %v526_v4 = vmul.f32 %v525_v8, %v2432_v37  ;;  %v643_v48 = vadd.f32 0.05243302, %v642_v25  ;;  %v2588_v56 = vmin.f32 %v1076_v6, 16.0 }
  0xd5   :  { %v2531_v11 = vmin.f32 %v716_v61, 16.0  ;;  %v681_v7 = vadd.f32 0.0036580483, %v680_v26  ;;  %v2569_v21 = vpop.eup %2124  ;;  %v1671_v62 = vmul.f32 %v1639_v17, %v295_v5  ;;  %v611_v26 = vmul.f32 %v610_v33, %v2480_v9 }
  0xd6   :  { %v237_v14 = vpop.f32.mrf.mxu0  ;;  %v540_v45 = vmul.f32 %v2569_v21, %v2539_v36  ;;  %v574_v46 = vadd.f32 0.112945676, %v573_v34  ;;  %3701 = vst [vmem:[#allocation5_spill] sm:$0xff] %v2588_v56  ;;  %v605_v59 = vadd.f32 0.18741608, %v604_v38  ;;  %v2595_v37 = vmul.f32 0.5, %v2404_v32 }
  0xd7   :  { %v2536_v20 = vadd.f32 %v2303_v15, %v237_v14  ;;  %v718_v35 = vmul.f32 2.1237322e-06, %v2531_v11  ;;  %v564_v14 = vmul.f32 %v563_v55, %v2473_v1  ;;  %v682_v57 = vmul.f32 %v681_v7, %v2513_v52 }
  0xd8   :  { %v1078_v63 = vmul.f32 2.1237322e-06, %v2588_v56  ;;  %v541_v43 = vsub.f32 1.0, %v540_v45  ;;  %v2599_v3 = vmul.f32 0.5, %v2437_v13  ;;  %v644_v28 = vmul.f32 %v643_v48, %v2504_v39 }
  0xd9   :  { %v2546_v31 = vmul.f32 0.70710677, %v2536_v20  ;;  %v719_v58 = vadd.f32 0.00028619796, %v718_v35  ;;  %v1701_v35 = vpack.c.bf16 %v1671_v62, %v1670_v27  ;;  %v565_v54 = vadd.f32 0.18741608, %v564_v14 }
  0xda   :  { %v612_v47 = vadd.f32 0.014752088, %v611_v26  ;;  %v527_v7 = vadd.f32 1.1283791, %v526_v4  ;;  %v2607_v32 = vmul.f32 0.5, %v2444_v23  ;;  %v606_v25 = vmul.f32 %v605_v59, %v2480_v9 }
  0xdb   :  { %v756_v18 = vmul.f32 %v2546_v31, %v2546_v31  ;;  %v720_v42 = vmul.f32 %v719_v58, %v2531_v11  ;;  %1797 = vmatmul.bf16.gmra.mxu1 %v1701_v35  ;;  %v683_v58 = vadd.f32 0.05243302, %v682_v57  ;;  %v566_v8 = vmul.f32 %v565_v54, %v2473_v1 }
  0xdc   :  { %v542_v62 = vmul.f32 %v2569_v21, %v541_v43  ;;  %v2618_v34 = vmul.f32 0.5, %v2463_v50  ;;  %v645_v38 = vadd.f32 0.18741608, %v644_v28  ;;  %v613_v57 = vmul.f32 %v612_v47, %v2480_v9  ;;  %v259_v50 = vpop.f32.mrf.mxu3 }
  0xdd   :  { %v2567_v16 = vmin.f32 %v756_v18, 16.0  ;;  %v721_v55 = vadd.f32 0.0036580483, %v720_v42  ;;  %v575_v18 = vmul.f32 %v574_v46, %v2473_v1  ;;  %v684_v27 = vmul.f32 %v683_v58, %v2513_v52 }
  0xde   :  { %v239_v61 = vpop.f32.mrf.mxu0  ;;  %v1079_v42 = vadd.f32 0.00028619796, %v1078_v63  ;;  %v567_v35 = vadd.f32 1.1283791, %v566_v8  ;;  %v607_v4 = vadd.f32 1.1283791, %v606_v25  ;;  %vm545_vm1 = vweird.f32 %v2569_v21 }
  0xdf   :  { %v2559_v0 = vadd.f32 %v2303_v15, %v239_v61  ;;  %v758_v40 = vmul.f32 2.1237322e-06, %v2567_v16  ;;  %v722_v14 = vmul.f32 %v721_v55, %v2531_v11  ;;  %v576_v17 = vadd.f32 0.4994258, %v575_v18 }
  0xe0   :  { %v685_v48 = vadd.f32 0.18741608, %v684_v27  ;;  %v543_v26 = vadd.f32 %v2569_v21, %v542_v62  ;;  %v550_v55 = vand.u32 2147483648, %v2539_v36  ;;  %v614_v18 = vadd.f32 0.112945676, %v613_v57 }
  0xe1   :  { %v2573_v30 = vmul.f32 0.70710677, %v2559_v0  ;;  %v759_v61 = vadd.f32 0.00028619796, %v758_v40  ;;  %v577_v6 = vmul.f32 %v576_v17, %v2473_v1  ;;  %v528_v40 = vmul.f32 %v527_v7, %v2413_v44 }
  0xe2   :  { %v723_v45 = vadd.f32 0.05243302, %v722_v14  ;;  %v646_v44 = vmul.f32 %v645_v38, %v2504_v39  ;;  %vm544_vm2 = vweird.f32 %v2539_v36  ;;  %v548_v58 = vand.u32 2147483647, %v2539_v36 }
  0xe3   :  { %v796_v24 = vmul.f32 %v2573_v30, %v2573_v30  ;;  %v760_v33 = vmul.f32 %v759_v61, %v2567_v16  ;;  %v2623_v46 = vadd.f32 1.0, %v577_v6  ;;  %v2637_v61 = vadd.f32 %v2303_v15, %v259_v50  ;;  %vm2652_vm3 = vmor %vm544_vm2, %vm545_vm1 }
  0xe4   :  { %v724_v59 = vmul.f32 %v723_v45, %v2531_v11  ;;  %v2640_v63 = vmul.f32 %v567_v35, %v2449_v29  ;;  %v2643_v43 = vmul.f32 0.5, %v2483_v10  ;;  %v2646_v28 = vmul.f32 0.5, %v2511_v51 }
  0xe5   :  { %v2602_v5 = vmin.f32 %v796_v24, 16.0  ;;  %v761_v1 = vadd.f32 0.0036580483, %v760_v33  ;;  %2126 = vrcp.f32 %v2623_v46  ;;  %v686_v36 = vmul.f32 %v685_v48, %v2513_v52 }
  0xe6   :  { %v242_v53 = vpop.f32.mrf.mxu0  ;;  %v547_v10 = vsel %vm2652_vm3, %v2569_v21, %v543_v26  ;;  %v647_v51 = vadd.f32 1.1283791, %v646_v44  ;;  %v551_v25 = vor.u32 1.1754944e-38, %v550_v55  ;;  %v615_v27 = vmul.f32 %v614_v18, %v2480_v9 }
  0xe7   :  { %v2592_v60 = vadd.f32 %v2303_v15, %v242_v53  ;;  %v798_v23 = vmul.f32 2.1237322e-06, %v2602_v5  ;;  %v1080_v53 = vmul.f32 %v1079_v42, %v2588_v56  ;;  %v762_v8 = vmul.f32 %v761_v1, %v2567_v16 }
  0xe8   :  { %v2664_v42 = vmul.f32 %v607_v4, %v2454_v41  ;;  %v725_v62 = vadd.f32 0.18741608, %v724_v59  ;;  %vm549_vm4 = vcmp.eq.f32.partialorder %v548_v58, 8.507059e+37  ;;  %v2667_v6 = vmul.f32 0.70710677, %v2637_v61 }
  0xe9   :  { %v2612_v13 = vmul.f32 0.70710677, %v2592_v60  ;;  %v799_v54 = vadd.f32 0.00028619796, %v798_v23  ;;  %v1081_v29 = vadd.f32 0.0036580483, %v1080_v53  ;;  %v552_v23 = vsel %vm549_vm4, %v551_v25, %v547_v10 }
  0xea   :  { %v2670_v38 = vmul.f32 0.5, %v2536_v20  ;;  %v2674_v35 = vadd.f32 1.1283791, %v686_v36  ;;  %v763_v45 = vadd.f32 0.05243302, %v762_v8  ;;  %v2681_v4 = vmul.f32 %v647_v51, %v2476_v19  ;;  %v262_v8 = vpop.f32.mrf.mxu3 }
  0xeb   :  { %v836_v24 = vmul.f32 %v2612_v13, %v2612_v13  ;;  %v800_v17 = vmul.f32 %v799_v54, %v2602_v5  ;;  %v2127_v33 = vpop.eup %2126  ;;  %v1082_v48 = vmul.f32 %v1081_v29, %v2588_v56  ;;  %v616_v20 = vadd.f32 0.4994258, %v615_v27 }
  0xec   :  { %v580_v57 = vmul.f32 %v2127_v33, %v2623_v46  ;;  %v726_v1 = vmul.f32 %v725_v62, %v2531_v11  ;;  %v553_v53 = vmul.f32 %v552_v23, %v528_v40  ;;  %v590_v26 = vand.u32 2147483648, %v2623_v46 }
  0xed   :  { %v2648_v47 = vmin.f32 %v836_v24, 16.0  ;;  %v801_v24 = vadd.f32 0.0036580483, %v800_v17  ;;  %v1116_v44 = vmul.f32 %v2667_v6, %v2667_v6  ;;  %vm585_vm5 = vweird.f32 %v2127_v33 }
  0xee   :  { %v244_v14 = vpop.f32.mrf.mxu0  ;;  %v581_v50 = vsub.f32 1.0, %v580_v57  ;;  %v588_v18 = vand.u32 2147483647, %v2623_v46  ;;  %v764_v59 = vmul.f32 %v763_v45, %v2567_v16  ;;  %v1083_v19 = vadd.f32 0.05243302, %v1082_v48 }
  0xef   :  { %v838_v21 = vmul.f32 2.1237322e-06, %v2648_v47  ;;  %v2678_v41 = vadd.f32 %v2303_v15, %v244_v14  ;;  %v617_v7 = vmul.f32 %v616_v20, %v2480_v9  ;;  %v802_v40 = vmul.f32 %v801_v24, %v2602_v5 }
  0xf0   :  { %v582_v55 = vmul.f32 %v2127_v33, %v581_v50  ;;  %vm584_vm6 = vweird.f32 %v2623_v46  ;;  %v649_v29 = vmul.f32 3.8918573e-05, %v2504_v39  ;;  %v591_v10 = vor.u32 1.1754944e-38, %v590_v26 }
  0xf1   :  { %v839_v54 = vadd.f32 0.00028619796, %v838_v21  ;;  %v2690_v58 = vmul.f32 0.70710677, %v2678_v41  ;;  %vm586_vm7 = vmor %vm584_vm6, %vm585_vm5  ;;  %v2696_v14 = vmin.f32 %v1116_v44, 16.0  ;;  %v2699_v51 = vadd.f32 %v2303_v15, %v262_v8 }
  0xf2   :  { %v583_v36 = vadd.f32 %v2127_v33, %v582_v55  ;;  %v2701_v25 = vadd.f32 1.0, %v617_v7  ;;  %v2015_v27 = vclamps-f32 %v553_v53, 1.0  ;;  %vm589_vm8 = vcmp.eq.f32.partialorder %v588_v18, 8.507059e+37 }
  0xf3   :  { %3704 = vst [vmem:[#allocation6_spill] sm:$0xff] %v2696_v14  ;;  %v840_v9 = vmul.f32 %v839_v54, %v2648_v47  ;;  %v1118_v46 = vmul.f32 2.1237322e-06, %v2696_v14  ;;  %v876_v23 = vmul.f32 %v2690_v58, %v2690_v58  ;;  %v650_v57 = vadd.f32 0.001143296, %v649_v29 }
  0xf4   :  { %v587_v62 = vsel %vm586_vm7, %v2127_v33, %v583_v36  ;;  %v1084_v45 = vmul.f32 %v1083_v19, %v2588_v56  ;;  %2128 = vrcp.f32 %v2701_v25  ;;  %v2714_v50 = vmul.f32 0.5, %v2559_v0 }
  0xf5   :  { %v592_v21 = vsel %vm589_vm8, %v591_v10, %v587_v62  ;;  %v803_v33 = vadd.f32 0.05243302, %v802_v40  ;;  %v2717_v20 = vmul.f32 0.5, %v2549_v49  ;;  %v2720_v53 = vmul.f32 0.70710677, %v2699_v51 }
  0xf6   :  { %v247_v17 = vpop.f32.mrf.mxu0  ;;  %v593_v48 = vmul.f32 %v592_v21, %v2640_v63  ;;  %v727_v26 = vadd.f32 1.1283791, %v726_v1  ;;  %v841_v44 = vadd.f32 0.0036580483, %v840_v9  ;;  %v1640_v55 = vadd.f32 1.0, %v2015_v27 }
  0xf7   :  { %v2710_v24 = vadd.f32 %v2303_v15, %v247_v17  ;;  %3705 = vst [vmem:[#allocation7_spill] sm:$0xff] %v2717_v20  ;;  %v765_v63 = vadd.f32 0.18741608, %v764_v59  ;;  %v1119_v18 = vadd.f32 0.00028619796, %v1118_v46  ;;  %v2722_v19 = vmin.f32 %v876_v23, 16.0 }
  0xf8   :  { %v2016_v54 = vclamps-f32 %v593_v48, 1.0  ;;  %v651_v7 = vmul.f32 %v650_v57, %v2504_v39  ;;  %v1085_v36 = vadd.f32 0.18741608, %v1084_v45  ;;  %v2726_v0 = vmul.f32 0.5, %v2592_v60 }
  0xf9   :  { %v2729_v49 = vmul.f32 0.70710677, %v2710_v24  ;;  %v804_v8 = vmul.f32 %v803_v33, %v2602_v5  ;;  %v2733_v1 = vmul.f32 0.5, %v2637_v61  ;;  %v1156_v59 = vmul.f32 %v2720_v53, %v2720_v53 }
  0xfa   :  { %v1641_v40 = vadd.f32 1.0, %v2016_v54  ;;  %v652_v29 = vadd.f32 0.014752088, %v651_v7  ;;  %v2737_v10 = vpop.eup %2128  ;;  %v842_v17 = vmul.f32 %v841_v44, %v2648_v47  ;;  %v1672_v60 = vmul.f32 %v1640_v55, %v2595_v37 }
  0xfb   :  { %3706 = vst [vmem:[#allocation8_spill] sm:$0xff] %v2733_v1  ;;  %v689_v27 = vmul.f32 3.8918573e-05, %v2513_v52  ;;  %v766_v62 = vmul.f32 %v765_v63, %v2567_v16  ;;  %v1120_v21 = vmul.f32 %v1119_v18, %v2696_v14  ;;  %v878_v61 = vmul.f32 2.1237322e-06, %v2722_v19 }
  0xfc   :  { %v1673_v9 = vmul.f32 %v1641_v40, %v2599_v3  ;;  %v620_v46 = vmul.f32 %v2737_v10, %v2701_v25  ;;  %v1086_v23 = vmul.f32 %v1085_v36, %v2588_v56  ;;  %v916_v45 = vmul.f32 %v2729_v49, %v2729_v49 }
  0xfd   :  { %v653_v37 = vmul.f32 %v652_v29, %v2504_v39  ;;  %v805_v3 = vadd.f32 0.18741608, %v804_v8  ;;  %v2752_v48 = vmin.f32 %v1156_v59, 16.0  ;;  %v690_v44 = vadd.f32 0.001143296, %v689_v27 }
  0xfe   :  { %v1702_v57 = vpack.c.bf16 %v1673_v9, %v1672_v60  ;;  %v621_v33 = vsub.f32 1.0, %v620_v46  ;;  %v2756_v54 = vmul.f32 %v2674_v35, %v2491_v22  ;;  %v843_v55 = vadd.f32 0.05243302, %v842_v17 }
  0xff   :  { %v654_v63 = vadd.f32 0.112945676, %v653_v37  ;;  %v729_v18 = vmul.f32 3.8918573e-05, %v2531_v11  ;;  %v1121_v7 = vadd.f32 0.0036580483, %v1120_v21  ;;  %v691_v29 = vmul.f32 %v690_v44, %v2513_v52  ;;  %v264_v44 = vpop.f32.mrf.mxu3 }
 0x100   :  { %1802 = vmatmul.bf16.gmra.mxu1 %v1702_v57  ;;  %v879_v36 = vadd.f32 0.00028619796, %v878_v61  ;;  %v1158_v40 = vmul.f32 2.1237322e-06, %v2752_v48  ;;  %v2761_v8 = vmin.f32 %v916_v45, 16.0  ;;  %v622_v59 = vmul.f32 %v2737_v10, %v621_v33 }
 0x101   :  { %v655_v60 = vmul.f32 %v654_v63, %v2504_v39  ;;  %v730_v9 = vadd.f32 0.001143296, %v729_v18  ;;  %v2766_v22 = vmul.f32 %v727_v26, %v2520_v12  ;;  %v767_v35 = vadd.f32 1.1283791, %v766_v62 }
 0x102   :  { %v1087_v17 = vadd.f32 1.1283791, %v1086_v23  ;;  %v692_v27 = vadd.f32 0.014752088, %v691_v29  ;;  %v806_v21 = vmul.f32 %v805_v3, %v2602_v5  ;;  %v844_v61 = vmul.f32 %v843_v55, %v2648_v47  ;;  %v249_v23 = vpop.f32.mrf.mxu0 }
 0x103   :  { %v656_v46 = vadd.f32 0.4994258, %v655_v60  ;;  %v731_v57 = vmul.f32 %v730_v9, %v2531_v11  ;;  %v1122_v45 = vmul.f32 %v1121_v7, %v2696_v14  ;;  %v880_v37 = vmul.f32 %v879_v36, %v2722_v19 }
 0x104   :  { %v1159_v33 = vadd.f32 0.00028619796, %v1158_v40  ;;  %v693_v63 = vmul.f32 %v692_v27, %v2513_v52  ;;  %v918_v12 = vmul.f32 2.1237322e-06, %v2761_v8  ;;  %v623_v26 = vadd.f32 %v2737_v10, %v622_v59 }
 0x105   :  { %vm625_vm9 = vweird.f32 %v2737_v10  ;;  %v657_v62 = vmul.f32 %v656_v46, %v2504_v39  ;;  %v628_v3 = vand.u32 2147483647, %v2701_v25  ;;  %v630_v55 = vand.u32 2147483648, %v2701_v25 }
 0x106   :  { %v2781_v18 = vadd.f32 %v2303_v15, %v264_v44  ;;  %v769_v7 = vmul.f32 3.8918573e-05, %v2567_v16  ;;  %vm624_vm10 = vweird.f32 %v2701_v25  ;;  %v694_v40 = vadd.f32 0.112945676, %v693_v63 }
 0x107   :  { %v2785_v36 = vadd.f32 1.0, %v657_v62  ;;  %v732_v29 = vadd.f32 0.014752088, %v731_v57  ;;  %v807_v59 = vadd.f32 1.1283791, %v806_v21  ;;  %v1160_v39 = vmul.f32 %v1159_v33, %v2752_v48  ;;  %vm2790_vm11 = vmor %vm624_vm10, %vm625_vm9 }
 0x108   :  { %v845_v60 = vadd.f32 0.18741608, %v844_v61  ;;  %v881_v9 = vadd.f32 0.0036580483, %v880_v37  ;;  %v627_v15 = vsel %vm2790_vm11, %v2737_v10, %v623_v26  ;;  %v2799_v25 = vmul.f32 0.70710677, %v2781_v18 }
 0x109   :  { %2130 = vrcp.f32 %v2785_v36  ;;  %v2804_v21 = vld [vmem:[%s3687_s2] ss:$0 sm:$0xff]  ;;  %v2810_v46 = vmul.f32 %v767_v35, %v2546_v31  ;;  %v1123_v57 = vadd.f32 0.05243302, %v1122_v45  ;;  %v631_v37 = vor.u32 1.1754944e-38, %v630_v55 }
 0x10a   :  { %v2807_v61 = vadd.f32 %v2804_v21, %v249_v23  ;;  %v770_v33 = vadd.f32 0.001143296, %v769_v7  ;;  %v919_v10 = vadd.f32 0.00028619796, %v918_v12  ;;  %vm629_vm12 = vcmp.eq.f32.partialorder %v628_v3, 8.507059e+37 }
 0x10b   :  { %v695_v44 = vmul.f32 %v694_v40, %v2513_v52  ;;  %v733_v63 = vmul.f32 %v732_v29, %v2531_v11  ;;  %v2815_v26 = vmul.f32 0.5, %v2678_v41  ;;  %v882_v62 = vmul.f32 %v881_v9, %v2722_v19 }
 0x10c   :  { %v1161_v27 = vadd.f32 0.0036580483, %v1160_v39  ;;  %v632_v23 = vsel %vm629_vm12, %v631_v37, %v627_v15  ;;  %v1196_v31 = vmul.f32 %v2799_v25, %v2799_v25  ;;  %v2821_v35 = vmul.f32 0.70710677, %v2807_v61 }
 0x10d   :  { %v696_v45 = vadd.f32 0.4994258, %v695_v44  ;;  %v734_v12 = vadd.f32 0.112945676, %v733_v63  ;;  %v2824_v3 = vmul.f32 %v807_v59, %v2573_v30  ;;  %v2827_v55 = vmul.f32 %v1087_v17, %v2562_v2  ;;  %v252_v30 = vpop.f32.mrf.mxu0  ;;  %v267_v44 = vpop.f32.mrf.mxu3 }
 0x10e   :  { %v2830_v41 = vmul.f32 0.5, %v2699_v51  ;;  %v771_v7 = vmul.f32 %v770_v33, %v2567_v16  ;;  %v846_v29 = vmul.f32 %v845_v60, %v2648_v47  ;;  %v1124_v9 = vmul.f32 %v1123_v57, %v2696_v14 }
 0x10f   :  { %3709 = vst [vmem:[#allocation9_spill] sm:$0xff] %v2827_v55  ;;  %v2131_v40 = vpop.eup %2130  ;;  %v2836_v39 = vmul.f32 0.5, %v2710_v24  ;;  %v920_v15 = vmul.f32 %v919_v10, %v2761_v8  ;;  %v883_v59 = vadd.f32 0.05243302, %v882_v62  ;;  %v1162_v2 = vmul.f32 %v1161_v27, %v2752_v48 }
 0x110   :  { %3710 = vst [vmem:[#allocation10_spill] sm:$0xff] %v2830_v41  ;;  %v633_v17 = vmul.f32 %v632_v23, %v2664_v42  ;;  %v660_v51 = vmul.f32 %v2131_v40, %v2785_v36  ;;  %v2842_v37 = vmin.f32 %v1196_v31, 16.0  ;;  %v956_v60 = vmul.f32 %v2821_v35, %v2821_v35 }
 0x111   :  { %3711 = vst [vmem:[#allocation11_spill] sm:$0xff] %v2836_v39  ;;  %v697_v57 = vmul.f32 %v696_v45, %v2513_v52  ;;  %v735_v24 = vmul.f32 %v734_v12, %v2531_v11  ;;  %v670_v10 = vand.u32 2147483648, %v2785_v36  ;;  %v2850_v63 = vadd.f32 %v2804_v21, %v252_v30 }
 0x112   :  { %v661_v33 = vsub.f32 1.0, %v660_v51  ;;  %v772_v62 = vadd.f32 0.014752088, %v771_v7  ;;  %v1198_v42 = vmul.f32 2.1237322e-06, %v2842_v37  ;;  %v2854_v27 = vadd.f32 %v2804_v21, %v267_v44 }
 0x113   :  { %v2856_v23 = vadd.f32 1.0, %v697_v57  ;;  %v736_v31 = vadd.f32 0.4994258, %v735_v24  ;;  %v921_v41 = vadd.f32 0.0036580483, %v920_v15  ;;  %vm665_vm13 = vweird.f32 %v2131_v40 }
 0x114   :  { %v662_v52 = vmul.f32 %v2131_v40, %v661_v33  ;;  %v668_v45 = vand.u32 2147483647, %v2785_v36  ;;  %v1163_v12 = vadd.f32 0.05243302, %v1162_v2  ;;  %v2017_v51 = vclamps-f32 %v633_v17, 1.0 }
 0x115   :  { %v2859_v1 = vmin.f32 %v956_v60, 16.0  ;;  %2132 = vrcp.f32 %v2856_v23  ;;  %vm664_vm14 = vweird.f32 %v2785_v36  ;;  %v671_v30 = vor.u32 1.1754944e-38, %v670_v10 }
 0x116   :  { %v663_v7 = vadd.f32 %v2131_v40, %v662_v52  ;;  %v2864_v44 = vmul.f32 0.70710677, %v2850_v63  ;;  %vm666_vm15 = vmor %vm664_vm14, %vm665_vm13  ;;  %v1199_v57 = vadd.f32 0.00028619796, %v1198_v42  ;;  %v2867_v15 = vmul.f32 0.70710677, %v2854_v27 }
 0x117   :  { %v737_v24 = vmul.f32 %v736_v31, %v2531_v11  ;;  %v773_v2 = vmul.f32 %v772_v62, %v2567_v16  ;;  %v1125_v17 = vadd.f32 0.18741608, %v1124_v9  ;;  %v884_v60 = vmul.f32 %v883_v59, %v2722_v19 }
 0x118   :  { %3712 = vst [vmem:[#allocation12_spill] sm:$0xff] %v2864_v44  ;;  %v667_v33 = vsel %vm666_vm15, %v2131_v40, %v663_v7  ;;  %vm669_vm0 = vcmp.eq.f32.partialorder %v668_v45, 8.507059e+37  ;;  %v1164_v36 = vmul.f32 %v1163_v12, %v2752_v48  ;;  %v922_v10 = vmul.f32 %v921_v41, %v2761_v8 }
 0x119   :  { %v672_v52 = vsel %vm669_vm0, %v671_v30, %v667_v33  ;;  %v958_v20 = vmul.f32 2.1237322e-06, %v2859_v1  ;;  %v1642_v55 = vadd.f32 1.0, %v2017_v51  ;;  %v996_v11 = vmul.f32 %v2864_v44, %v2864_v44 }
 0x11a   :  { %v673_v42 = vmul.f32 %v672_v52, %v2681_v4  ;;  %v2878_v31 = vadd.f32 1.0, %v737_v24  ;;  %v847_v62 = vadd.f32 1.1283791, %v846_v29  ;;  %v1200_v40 = vmul.f32 %v1199_v57, %v2842_v37 }
 0x11b   :  { %v2133_v9 = vpop.eup %2132  ;;  %v1236_v59 = vmul.f32 %v2867_v15, %v2867_v15  ;;  %v774_v45 = vadd.f32 0.112945676, %v773_v2  ;;  %v1126_v41 = vmul.f32 %v1125_v17, %v2696_v14  ;;  %v885_v12 = vadd.f32 0.18741608, %v884_v60 }
 0x11c   :  { %v2018_v7 = vclamps-f32 %v673_v42, 1.0  ;;  %v700_v4 = vmul.f32 %v2133_v9, %v2856_v23  ;;  %v1165_v51 = vadd.f32 0.18741608, %v1164_v36  ;;  %v923_v30 = vadd.f32 0.05243302, %v922_v10 }
 0x11d   :  { %v959_v33 = vadd.f32 0.00028619796, %v958_v20  ;;  %2134 = vrcp.f32 %v2878_v31  ;;  %v1674_v29 = vmul.f32 %v1642_v55, %v2607_v32  ;;  %v2887_v52 = vmin.f32 %v996_v11, 16.0 }
 0x11e   :  { %v1643_v24 = vadd.f32 1.0, %v2018_v7  ;;  %v701_v57 = vsub.f32 1.0, %v700_v4  ;;  %v1201_v39 = vadd.f32 0.0036580483, %v1200_v40  ;;  %v2889_v44 = vmin.f32 %v1236_v59, 16.0 }
 0x11f   :  { %v710_v2 = vand.u32 2147483648, %v2856_v23  ;;  %v775_v17 = vmul.f32 %v774_v45, %v2567_v16  ;;  %vm705_vm1 = vweird.f32 %v2133_v9  ;;  %v708_v20 = vand.u32 2147483647, %v2856_v23 }
 0x120   :  { %v1675_v60 = vmul.f32 %v1643_v24, %v2618_v34  ;;  %v702_v36 = vmul.f32 %v2133_v9, %v701_v57  ;;  %v886_v10 = vmul.f32 %v885_v12, %v2722_v19  ;;  %v924_v32 = vmul.f32 %v923_v30, %v2761_v8 }
 0x121   :  { %v960_v55 = vmul.f32 %v959_v33, %v2859_v1  ;;  %v1238_v42 = vmul.f32 2.1237322e-06, %v2889_v44  ;;  %v998_v40 = vmul.f32 2.1237322e-06, %v2887_v52  ;;  %vm704_vm2 = vweird.f32 %v2856_v23 }
 0x122   :  { %v1703_v11 = vpack.c.bf16 %v1675_v60, %v1674_v29  ;;  %v703_v59 = vadd.f32 %v2133_v9, %v702_v36  ;;  %v1127_v34 = vadd.f32 1.1283791, %v1126_v41  ;;  %v1202_v7 = vmul.f32 %v1201_v39, %v2842_v37  ;;  %vm706_vm3 = vmor %vm704_vm2, %vm705_vm1 }
 0x123   :  { %v2135_v45 = vpop.eup %2134  ;;  %v711_v4 = vor.u32 1.1754944e-38, %v710_v2  ;;  %v776_v24 = vadd.f32 0.4994258, %v775_v17  ;;  %v1166_v12 = vmul.f32 %v1165_v51, %v2752_v48  ;;  %vm709_vm4 = vcmp.eq.f32.partialorder %v708_v20, 8.507059e+37  ;;  %v269_v17 = vpop.f32.mrf.mxu3 }
 0x124   :  { %1807 = vmatmul.bf16.gmra.mxu1 %v1703_v11  ;;  %v707_v30 = vsel %vm706_vm3, %v2133_v9, %v703_v59  ;;  %v740_v33 = vmul.f32 %v2135_v45, %v2878_v31  ;;  %v925_v29 = vadd.f32 0.18741608, %v924_v32  ;;  %v961_v57 = vadd.f32 0.0036580483, %v960_v55  ;;  %v254_v11 = vpop.f32.mrf.mxu0 }
 0x125   :  { %v1239_v60 = vadd.f32 0.00028619796, %v1238_v42  ;;  %v712_v36 = vsel %vm709_vm4, %v711_v4, %v707_v30  ;;  %v2905_v23 = vmul.f32 %v847_v62, %v2612_v13  ;;  %v887_v41 = vadd.f32 1.1283791, %v886_v10 }
 0x126   :  { %v999_v14 = vadd.f32 0.00028619796, %v998_v40  ;;  %v741_v39 = vsub.f32 1.0, %v740_v33  ;;  %v1203_v56 = vadd.f32 0.05243302, %v1202_v7  ;;  %v750_v2 = vand.u32 2147483648, %v2878_v31 }
 0x127   :  { %v777_v51 = vmul.f32 %v776_v24, %v2567_v16  ;;  %v809_v9 = vmul.f32 3.8918573e-05, %v2602_v5  ;;  %v713_v20 = vmul.f32 %v712_v36, %v2756_v54  ;;  %vm745_vm5 = vweird.f32 %v2135_v45 }
 0x128   :  { %v742_v32 = vmul.f32 %v2135_v45, %v741_v39  ;;  %v748_v55 = vand.u32 2147483647, %v2878_v31  ;;  %v1167_v42 = vadd.f32 1.1283791, %v1166_v12  ;;  %v926_v13 = vmul.f32 %v925_v29, %v2761_v8 }
 0x129   :  { %v962_v62 = vmul.f32 %v961_v57, %v2859_v1  ;;  %v1240_v10 = vmul.f32 %v1239_v60, %v2889_v44  ;;  %v1000_v40 = vmul.f32 %v999_v14, %v2887_v52  ;;  %vm744_vm6 = vweird.f32 %v2878_v31 }
 0x12a   :  { %v743_v59 = vadd.f32 %v2135_v45, %v742_v32  ;;  %v2918_v16 = vadd.f32 %v2804_v21, %v269_v17  ;;  %v1204_v54 = vmul.f32 %v1203_v56, %v2842_v37  ;;  %vm746_vm7 = vmor %vm744_vm6, %vm745_vm5  ;;  %v751_v7 = vor.u32 1.1754944e-38, %v750_v2 }
 0x12b   :  { %v2921_v4 = vadd.f32 1.0, %v777_v51  ;;  %v810_v24 = vadd.f32 0.001143296, %v809_v9  ;;  %v2019_v12 = vclamps-f32 %v713_v20, 1.0  ;;  %vm749_vm8 = vcmp.eq.f32.partialorder %v748_v55, 8.507059e+37  ;;  %v272_v20 = vpop.f32.mrf.mxu3 }
 0x12c   :  { %v747_v30 = vsel %vm746_vm7, %v2135_v45, %v743_v59  ;;  %v2924_v33 = vadd.f32 %v2804_v21, %v254_v11  ;;  %v963_v14 = vadd.f32 0.05243302, %v962_v62  ;;  %v1241_v29 = vadd.f32 0.0036580483, %v1240_v10 }
 0x12d   :  { %v752_v57 = vsel %vm749_vm8, %v751_v7, %v747_v30  ;;  %2136 = vrcp.f32 %v2921_v4  ;;  %v2928_v31 = vmul.f32 %v1127_v34, %v2667_v6  ;;  %v2931_v56 = vmul.f32 %v887_v41, %v2690_v58 }
 0x12e   :  { %v753_v60 = vmul.f32 %v752_v57, %v2766_v22  ;;  %v2935_v36 = vmul.f32 0.70710677, %v2918_v16  ;;  %v1205_v45 = vadd.f32 0.18741608, %v1204_v54  ;;  %v1001_v39 = vadd.f32 0.0036580483, %v1000_v40 }
 0x12f   :  { %v811_v2 = vmul.f32 %v810_v24, %v2602_v5  ;;  %v849_v17 = vmul.f32 3.8918573e-05, %v2648_v47  ;;  %v2940_v51 = vmul.f32 %v1167_v42, %v2720_v53  ;;  %v1644_v6 = vadd.f32 1.0, %v2019_v12 }
 0x130   :  { %v2020_v9 = vclamps-f32 %v753_v60, 1.0  ;;  %v2943_v34 = vmul.f32 0.70710677, %v2924_v33  ;;  %v927_v58 = vadd.f32 1.1283791, %v926_v13  ;;  %v964_v22 = vmul.f32 %v963_v14, %v2859_v1 }
 0x131   :  { %v1242_v41 = vmul.f32 %v1241_v29, %v2889_v44  ;;  %v812_v32 = vadd.f32 0.014752088, %v811_v2  ;;  %v2948_v55 = vmul.f32 0.5, %v2781_v18  ;;  %v1276_v53 = vmul.f32 %v2935_v36, %v2935_v36 }
 0x132   :  { %v1645_v62 = vadd.f32 1.0, %v2020_v9  ;;  %v850_v42 = vadd.f32 0.001143296, %v849_v17  ;;  %v1206_v11 = vmul.f32 %v1205_v45, %v2842_v37  ;;  %v1002_v13 = vmul.f32 %v1001_v39, %v2887_v52 }
 0x133   :  { %v2952_v10 = vpop.eup %2136  ;;  %v813_v40 = vmul.f32 %v812_v32, %v2602_v5  ;;  %v889_v59 = vmul.f32 3.8918573e-05, %v2722_v19  ;;  %v1676_v54 = vmul.f32 %v1644_v6, %v2643_v43  ;;  %v1036_v7 = vmul.f32 %v2943_v34, %v2943_v34 }
 0x134   :  { %v1677_v18 = vmul.f32 %v1645_v62, %v2646_v28  ;;  %v780_v24 = vmul.f32 %v2952_v10, %v2921_v4  ;;  %v965_v12 = vadd.f32 0.18741608, %v964_v22  ;;  %v1243_v30 = vadd.f32 0.05243302, %v1242_v41 }
 0x135   :  { %v814_v14 = vadd.f32 0.112945676, %v813_v40  ;;  %v851_v29 = vmul.f32 %v850_v42, %v2648_v47  ;;  %v2965_v60 = vmin.f32 %v1276_v53, 16.0  ;;  %v2968_v45 = vadd.f32 %v2804_v21, %v272_v20 }
 0x136   :  { %v1704_v57 = vpack.c.bf16 %v1677_v18, %v1676_v54  ;;  %v781_v43 = vsub.f32 1.0, %v780_v24  ;;  %v1003_v39 = vadd.f32 0.05243302, %v1002_v13  ;;  %v890_v17 = vadd.f32 0.001143296, %v889_v59  ;;  %v274_v24 = vpop.f32.mrf.mxu3 }
 0x137   :  { %v815_v28 = vmul.f32 %v814_v14, %v2602_v5  ;;  %v852_v2 = vadd.f32 0.014752088, %v851_v29  ;;  %v2972_v9 = vmul.f32 0.5, %v2807_v61  ;;  %v1278_v6 = vmul.f32 2.1237322e-06, %v2965_v60 }
 0x138   :  { %1812 = vmatmul.bf16.gmra.mxu1 %v1704_v57  ;;  %v2975_v22 = vmin.f32 %v1036_v7, 16.0  ;;  %v929_v41 = vmul.f32 3.8918573e-05, %v2761_v8  ;;  %v782_v32 = vmul.f32 %v2952_v10, %v781_v43  ;;  %v891_v53 = vmul.f32 %v890_v17, %v2722_v19 }
 0x139   :  { %v816_v20 = vadd.f32 0.4994258, %v815_v28  ;;  %v853_v62 = vmul.f32 %v852_v2, %v2648_v47  ;;  %v2982_v42 = vmul.f32 %v927_v58, %v2729_v49  ;;  %v2985_v61 = vmul.f32 0.5, %v2854_v27 }
 0x13a   :  { %v1244_v13 = vmul.f32 %v1243_v30, %v2889_v44  ;;  %v2989_v40 = vmul.f32 0.70710677, %v2968_v45  ;;  %v1207_v59 = vadd.f32 1.1283791, %v1206_v11  ;;  %v966_v54 = vmul.f32 %v965_v12, %v2859_v1 }
 0x13b   :  { %3713 = vst [vmem:[#allocation13_spill] sm:$0xff] %v2985_v61  ;;  %v1004_v18 = vmul.f32 %v1003_v39, %v2887_v52  ;;  %v817_v7 = vmul.f32 %v816_v20, %v2602_v5  ;;  %v1279_v14 = vadd.f32 0.00028619796, %v1278_v6  ;;  %v1038_v49 = vmul.f32 2.1237322e-06, %v2975_v22 }
 0x13c   :  { %vm785_vm9 = vweird.f32 %v2952_v10  ;;  %v930_v27 = vadd.f32 0.001143296, %v929_v41  ;;  %v783_v58 = vadd.f32 %v2952_v10, %v782_v32  ;;  %v854_v29 = vadd.f32 0.112945676, %v853_v62 }
 0x13d   :  { %v2997_v30 = vadd.f32 1.0, %v817_v7  ;;  %v892_v57 = vadd.f32 0.014752088, %v891_v53  ;;  %v1245_v11 = vadd.f32 0.18741608, %v1244_v13  ;;  %v3000_v12 = vmul.f32 0.5, %v2850_v63 }
 0x13e   :  { %v1316_v5 = vmul.f32 %v2989_v40, %v2989_v40  ;;  %v790_v43 = vand.u32 2147483648, %v2921_v4  ;;  %v3006_v39 = vmul.f32 %v1207_v59, %v2799_v25  ;;  %vm784_vm10 = vweird.f32 %v2921_v4 }
 0x13f   :  { %v788_v28 = vand.u32 2147483647, %v2921_v4  ;;  %2138 = vrcp.f32 %v2997_v30  ;;  %v967_v2 = vadd.f32 1.1283791, %v966_v54  ;;  %v1005_v17 = vadd.f32 0.18741608, %v1004_v18  ;;  %vm3014_vm11 = vmor %vm784_vm10, %vm785_vm9 }
 0x140   :  { %v1280_v6 = vmul.f32 %v1279_v14, %v2965_v60  ;;  %v931_v41 = vmul.f32 %v930_v27, %v2761_v8  ;;  %v1039_v25 = vadd.f32 0.00028619796, %v1038_v49  ;;  %v787_v32 = vsel %vm3014_vm11, %v2952_v10, %v783_v58 }
 0x141   :  { %v855_v4 = vmul.f32 %v854_v29, %v2648_v47  ;;  %v893_v20 = vmul.f32 %v892_v57, %v2722_v19  ;;  %v1246_v62 = vmul.f32 %v1245_v11, %v2889_v44  ;;  %v3026_v53 = vmul.f32 0.5, %v2918_v16  ;;  %v277_v11 = vpop.f32.mrf.mxu3 }
 0x142   :  { %v3028_v13 = vmin.f32 %v1316_v5, 16.0  ;;  %v791_v59 = vor.u32 1.1754944e-38, %v790_v43  ;;  %vm789_vm12 = vcmp.eq.f32.partialorder %v788_v28, 8.507059e+37  ;;  %v3031_v54 = vadd.f32 %v2804_v21, %v274_v24 }
 0x143   :  { %3716 = vst [vmem:[#allocation14_spill] sm:$0xff] %v3026_v53  ;;  %v856_v18 = vadd.f32 0.4994258, %v855_v4  ;;  %v894_v7 = vadd.f32 0.112945676, %v893_v20  ;;  %v3035_v29 = vmul.f32 %v967_v2, %v2821_v35  ;;  %v1006_v16 = vmul.f32 %v1005_v17, %v2887_v52 }
 0x144   :  { %v1281_v14 = vadd.f32 0.0036580483, %v1280_v6  ;;  %v1318_v10 = vmul.f32 2.1237322e-06, %v3028_v13  ;;  %v792_v49 = vsel %vm789_vm12, %v791_v59, %v787_v32  ;;  %v932_v27 = vadd.f32 0.014752088, %v931_v41 }
 0x145   :  { %v2139_v58 = vpop.eup %2138  ;;  %v1040_v57 = vmul.f32 %v1039_v25, %v2975_v22  ;;  %v857_v5 = vmul.f32 %v856_v18, %v2648_v47  ;;  %v3040_v24 = vadd.f32 1.1283791, %v1246_v62  ;;  %v895_v28 = vmul.f32 %v894_v7, %v2722_v19 }
 0x146   :  { %v820_v43 = vmul.f32 %v2139_v58, %v2997_v30  ;;  %v933_v6 = vmul.f32 %v932_v27, %v2761_v8  ;;  %v793_v63 = vmul.f32 %v792_v49, %v2810_v46  ;;  %v3047_v35 = vmul.f32 0.70710677, %v3031_v54 }
 0x147   :  { %v3050_v2 = vadd.f32 %v2804_v21, %v277_v11  ;;  %v3052_v17 = vadd.f32 1.0, %v857_v5  ;;  %v1282_v47 = vmul.f32 %v1281_v14, %v2965_v60  ;;  %v1319_v41 = vadd.f32 0.00028619796, %v1318_v10 }
 0x148   :  { %v821_v25 = vsub.f32 1.0, %v820_v43  ;;  %v896_v32 = vadd.f32 0.4994258, %v895_v28  ;;  %v1041_v4 = vadd.f32 0.0036580483, %v1040_v57  ;;  %v830_v62 = vand.u32 2147483648, %v2997_v30 }
 0x149   :  { %v828_v20 = vand.u32 2147483647, %v2997_v30  ;;  %2140 = vrcp.f32 %v3052_v17  ;;  %vm825_vm13 = vweird.f32 %v2139_v58  ;;  %v934_v18 = vadd.f32 0.112945676, %v933_v6 }
 0x14a   :  { %v822_v46 = vmul.f32 %v2139_v58, %v821_v25  ;;  %v897_v59 = vmul.f32 %v896_v32, %v2722_v19  ;;  %v3059_v7 = vadd.f32 1.1283791, %v1006_v16  ;;  %v2021_v49 = vclamps-f32 %v793_v63, 1.0 }
 0x14b   :  { %v1356_v14 = vmul.f32 %v3047_v35, %v3047_v35  ;;  %v3064_v10 = vmul.f32 0.70710677, %v3050_v2  ;;  %v1320_v27 = vmul.f32 %v1319_v41, %v3028_v13  ;;  %vm824_vm14 = vweird.f32 %v2997_v30 }
 0x14c   :  { %v823_v57 = vadd.f32 %v2139_v58, %v822_v46  ;;  %v3068_v11 = vadd.f32 1.0, %v897_v59  ;;  %v1283_v5 = vadd.f32 0.05243302, %v1282_v47  ;;  %v1042_v19 = vmul.f32 %v1041_v4, %v2975_v22  ;;  %vm826_vm15 = vmor %vm824_vm14, %vm825_vm13  ;;  %v279_v47 = vpop.f32.mrf.mxu3 }
 0x14d   :  { %v831_v16 = vor.u32 1.1754944e-38, %v830_v62  ;;  %v969_v43 = vmul.f32 3.8918573e-05, %v2859_v1  ;;  %vm829_vm0 = vcmp.eq.f32.partialorder %v828_v20, 8.507059e+37  ;;  %v935_v6 = vmul.f32 %v934_v18, %v2761_v8 }
 0x14e   :  { %v827_v28 = vsel %vm826_vm15, %v2139_v58, %v823_v57  ;;  %2142 = vrcp.f32 %v3068_v11  ;;  %v1646_v25 = vadd.f32 1.0, %v2021_v49  ;;  %v3074_v32 = vmin.f32 %v1356_v14, 16.0 }
 0x14f   :  { %v2141_v63 = vpop.eup %2140  ;;  %v832_v41 = vsel %vm829_vm0, %v831_v16, %v827_v28  ;;  %v1396_v30 = vmul.f32 %v3064_v10, %v3064_v10  ;;  %v3079_v4 = vmul.f32 0.5, %v2924_v33  ;;  %v1321_v62 = vadd.f32 0.0036580483, %v1320_v27 }
 0x150   :  { %v833_v58 = vmul.f32 %v832_v41, %v2824_v3  ;;  %v860_v20 = vmul.f32 %v2141_v63, %v3052_v17  ;;  %v1284_v46 = vmul.f32 %v1283_v5, %v2965_v60  ;;  %v1043_v59 = vadd.f32 0.05243302, %v1042_v19 }
 0x151   :  { %v1358_v18 = vmul.f32 2.1237322e-06, %v3074_v32  ;;  %v970_v49 = vadd.f32 0.001143296, %v969_v43  ;;  %v3086_v16 = vadd.f32 %v2804_v21, %v279_v47  ;;  %v936_v28 = vadd.f32 0.4994258, %v935_v6 }
 0x152   :  { %v2022_v14 = vclamps-f32 %v833_v58, 1.0  ;;  %v861_v57 = vsub.f32 1.0, %v860_v20  ;;  %v1678_v33 = vmul.f32 %v1646_v25, %v2670_v38  ;;  %v3089_v53 = vmin.f32 %v1396_v30, 16.0 }
 0x153   :  { %3717 = vst [vmem:[#allocation15_spill] sm:$0xff] %v3086_v16  ;;  %v868_v3 = vand.u32 2147483647, %v3052_v17  ;;  %v870_v27 = vand.u32 2147483648, %v3052_v17  ;;  %vm865_vm1 = vweird.f32 %v2141_v63  ;;  %v937_v43 = vmul.f32 %v936_v28, %v2761_v8 }
 0x154   :  { %v2143_v41 = vpop.eup %2142  ;;  %v1647_v5 = vadd.f32 1.0, %v2022_v14  ;;  %v862_v19 = vmul.f32 %v2141_v63, %v861_v57  ;;  %v1359_v58 = vadd.f32 0.00028619796, %v1358_v18  ;;  %vm864_vm2 = vweird.f32 %v3052_v17 }
 0x155   :  { %v900_v47 = vmul.f32 %v2143_v41, %v3068_v11  ;;  %v971_v6 = vmul.f32 %v970_v49, %v2859_v1  ;;  %v1398_v25 = vmul.f32 2.1237322e-06, %v3089_v53  ;;  %v3100_v20 = vmul.f32 0.70710677, %v3086_v16  ;;  %vm866_vm3 = vmor %vm864_vm2, %vm865_vm1 }
 0x156   :  { %v1679_v38 = vmul.f32 %v1647_v5, %v2714_v50  ;;  %v863_v30 = vadd.f32 %v2141_v63, %v862_v19  ;;  %vm869_vm4 = vcmp.eq.f32.partialorder %v868_v3, 8.507059e+37  ;;  %v871_v14 = vor.u32 1.1754944e-38, %v870_v27 }
 0x157   :  { %v901_v57 = vsub.f32 1.0, %v900_v47  ;;  %v908_v8 = vand.u32 2147483647, %v3068_v11  ;;  %v910_v28 = vand.u32 2147483648, %v3068_v11  ;;  %v3104_v61 = vadd.f32 1.0, %v937_v43 }
 0x158   :  { %v1705_v18 = vpack.c.bf16 %v1679_v38, %v1678_v33  ;;  %v867_v17 = vsel %vm866_vm3, %v2141_v63, %v863_v30  ;;  %vm905_vm5 = vweird.f32 %v2143_v41  ;;  %v972_v5 = vadd.f32 0.014752088, %v971_v6 }
 0x159   :  { %v872_v49 = vsel %vm869_vm4, %v871_v14, %v867_v17  ;;  %v902_v50 = vmul.f32 %v2143_v41, %v901_v57  ;;  %v1360_v19 = vmul.f32 %v1359_v58, %v3074_v32  ;;  %v1436_v3 = vmul.f32 %v3100_v20, %v3100_v20  ;;  %v282_v57 = vpop.f32.mrf.mxu3 }
 0x15a   :  { %1817 = vmatmul.bf16.gmra.mxu1 %v1705_v18  ;;  %v873_v16 = vmul.f32 %v872_v49, %v2905_v23  ;;  %2144 = vrcp.f32 %v3104_v61  ;;  %v3113_v63 = vmul.f32 %v3040_v24, %v2867_v15  ;;  %v1322_v33 = vmul.f32 %v1321_v62, %v3028_v13 }
 0x15b   :  { %v903_v27 = vadd.f32 %v2143_v41, %v902_v50  ;;  %vm904_vm6 = vweird.f32 %v3068_v11  ;;  %v3118_v43 = vmul.f32 0.5, %v2968_v45  ;;  %v1399_v58 = vadd.f32 0.00028619796, %v1398_v25 }
 0x15c   :  { %v2023_v47 = vclamps-f32 %v873_v16, 1.0  ;;  %vm906_vm7 = vmor %vm904_vm6, %vm905_vm5  ;;  %v911_v23 = vor.u32 1.1754944e-38, %v910_v28  ;;  %v1285_v6 = vadd.f32 0.18741608, %v1284_v46  ;;  %vm909_vm8 = vcmp.eq.f32.partialorder %v908_v8, 8.507059e+37 }
 0x15d   :  { %v907_v38 = vsel %vm906_vm7, %v2143_v41, %v903_v27  ;;  %v973_v30 = vmul.f32 %v972_v5, %v2859_v1  ;;  %v1044_v15 = vmul.f32 %v1043_v59, %v2975_v22  ;;  %v1361_v24 = vadd.f32 0.0036580483, %v1360_v19 }
 0x15e   :  { %v912_v14 = vsel %vm909_vm8, %v911_v23, %v907_v38  ;;  %v3122_v62 = vmin.f32 %v1436_v3, 16.0  ;;  %v1323_v11 = vadd.f32 0.05243302, %v1322_v33  ;;  %v3126_v25 = vadd.f32 %v2804_v21, %v282_v57 }
 0x15f   :  { %v913_v45 = vmul.f32 %v912_v14, %v2931_v56  ;;  %v974_v16 = vadd.f32 0.112945676, %v973_v30  ;;  %v1400_v46 = vmul.f32 %v1399_v58, %v3089_v53  ;;  %v1648_v41 = vadd.f32 1.0, %v2023_v47 }
 0x160   :  { %3718 = vst [vmem:[#allocation16_spill] sm:$0xff] %v3126_v25  ;;  %v3128_v18 = vpop.eup %2144  ;;  %v1438_v8 = vmul.f32 2.1237322e-06, %v3122_v62  ;;  %v1009_v59 = vmul.f32 3.8918573e-05, %v2887_v52  ;;  %v1286_v17 = vmul.f32 %v1285_v6, %v2965_v60  ;;  %v1362_v5 = vmul.f32 %v1361_v24, %v3074_v32 }
 0x161   :  { %v2024_v28 = vclamps-f32 %v913_v45, 1.0  ;;  %v940_v49 = vmul.f32 %v3128_v18, %v3104_v61  ;;  %v975_v56 = vmul.f32 %v974_v16, %v2859_v1  ;;  %v1045_v50 = vadd.f32 0.18741608, %v1044_v15 }
 0x162   :  { %v1010_v19 = vadd.f32 0.001143296, %v1009_v59  ;;  %v1049_v3 = vmul.f32 3.8918573e-05, %v2975_v22  ;;  %v3140_v27 = vmul.f32 0.70710677, %v3126_v25  ;;  %v1680_v6 = vmul.f32 %v1648_v41, %v2726_v0 }
 0x163   :  { %v1649_v33 = vadd.f32 1.0, %v2024_v28  ;;  %v941_v58 = vsub.f32 1.0, %v940_v49  ;;  %v976_v47 = vadd.f32 0.4994258, %v975_v56  ;;  %v1401_v23 = vadd.f32 0.0036580483, %v1400_v46  ;;  %v1793_v56 = vpop.f32.mrf.mxu1 }
 0x164   :  { %3719 = vst [vmem:[#allocation17_spill] sm:$0xff] %v3140_v27  ;;  %v1439_v38 = vadd.f32 0.00028619796, %v1438_v8  ;;  %v1011_v30 = vmul.f32 %v1010_v19, %v2887_v52  ;;  %v1050_v57 = vadd.f32 0.001143296, %v1049_v3  ;;  %v1324_v16 = vmul.f32 %v1323_v11, %v3028_v13 }
 0x165   :  { %v1681_v14 = vmul.f32 %v1649_v33, %v2815_v26  ;;  %v942_v15 = vmul.f32 %v3128_v18, %v941_v58  ;;  %v977_v24 = vmul.f32 %v976_v47, %v2859_v1  ;;  %v1287_v45 = vadd.f32 1.1283791, %v1286_v17  ;;  %v3720_v33 = vld [vmem:[#allocation5_spill] sm:$0xff] }
 0x166   :  { %v1363_v59 = vadd.f32 0.05243302, %v1362_v5  ;;  %v1012_v28 = vadd.f32 0.014752088, %v1011_v30  ;;  %v3149_v49 = vmul.f32 0.5, %v3031_v54  ;;  %v1476_v0 = vmul.f32 %v3140_v27, %v3140_v27 }
 0x167   :  { %v1706_v46 = vpack.c.bf16 %v1681_v14, %v1680_v6  ;;  %v3153_v41 = vadd.f32 1.0, %v977_v24  ;;  %v1046_v26 = vmul.f32 %v1045_v50, %v2975_v22  ;;  %v1402_v8 = vmul.f32 %v1401_v23, %v3089_v53  ;;  %v3165_v54 = vld [vmem:[%s3689_s4] ss:$0 sm:$0xff] }
 0x168   :  { %v1440_v1 = vmul.f32 %v1439_v38, %v3122_v62  ;;  %v1013_v17 = vmul.f32 %v1012_v28, %v2887_v52  ;;  %v943_v11 = vadd.f32 %v3128_v18, %v942_v15  ;;  %vm945_vm9 = vweird.f32 %v3128_v18  ;;  %v3721_v38 = vld [vmem:[#allocation12_spill] sm:$0xff] }
 0x169   :  { %2146 = vrcp.f32 %v3153_v41  ;;  %v1051_v50 = vmul.f32 %v1050_v57, %v2975_v22  ;;  %v1325_v5 = vadd.f32 0.18741608, %v1324_v16  ;;  %v1364_v19 = vmul.f32 %v1363_v59, %v3074_v32 }
 0x16a   :  { %1822 = vmatmul.bf16.gmra.mxu1 %v1706_v46  ;;  %v950_v3 = vand.u32 2147483648, %v3104_v61  ;;  %v1089_v58 = vmul.f32 3.8918573e-05, %v3720_v33  ;;  %v3171_v47 = vmin.f32 %v1476_v0, 16.0  ;;  %vm944_vm10 = vweird.f32 %v3104_v61  ;;  %v284_v0 = vpop.f32.mrf.mxu3 }
 0x16b   :  { %v948_v23 = vand.u32 2147483647, %v3104_v61  ;;  %v1794_v6 = vadd.f32 %v3165_v54, %v1793_v56  ;;  %v3178_v30 = vmul.f32 %v3059_v7, %v3721_v38  ;;  %v1403_v14 = vadd.f32 0.05243302, %v1402_v8  ;;  %vm3182_vm11 = vmor %vm944_vm10, %vm945_vm9 }
 0x16c   :  { %v1441_v15 = vadd.f32 0.0036580483, %v1440_v1  ;;  %v1014_v57 = vadd.f32 0.112945676, %v1013_v17  ;;  %v3187_v16 = vmul.f32 %v1287_v45, %v2935_v36  ;;  %v1478_v61 = vmul.f32 2.1237322e-06, %v3171_v47 }
 0x16d   :  { %v947_v59 = vsel %vm3182_vm11, %v3128_v18, %v943_v11  ;;  %1873 = vst [vmem:[#allocation2] sm:$0xff] %v1794_v6  ;;  %v1052_v7 = vadd.f32 0.014752088, %v1051_v50  ;;  %v1047_v28 = vadd.f32 1.1283791, %v1046_v26  ;;  %v951_v46 = vor.u32 1.1754944e-38, %v950_v3 }
 0x16e   :  { %v1015_v8 = vmul.f32 %v1014_v57, %v2887_v52  ;;  %v1090_v1 = vadd.f32 0.001143296, %v1089_v58  ;;  %v1326_v17 = vmul.f32 %v1325_v5, %v3028_v13  ;;  %v1365_v38 = vadd.f32 0.18741608, %v1364_v19  ;;  %v3724_v36 = vld [vmem:[#allocation6_spill] sm:$0xff] }
 0x16f   :  { %v2147_v56 = vpop.eup %2146  ;;  %vm949_vm12 = vcmp.eq.f32.partialorder %v948_v23, 8.507059e+37  ;;  %v1129_v45 = vmul.f32 3.8918573e-05, %v3724_v36  ;;  %v1404_v25 = vmul.f32 %v1403_v14, %v3089_v53  ;;  %v1442_v26 = vmul.f32 %v1441_v15, %v3122_v62 }
 0x170   :  { %v952_v27 = vsel %vm949_vm12, %v951_v46, %v947_v59  ;;  %v980_v18 = vmul.f32 %v2147_v56, %v3153_v41  ;;  %v1016_v11 = vadd.f32 0.4994258, %v1015_v8  ;;  %v1479_v50 = vadd.f32 0.00028619796, %v1478_v61 }
 0x171   :  { %v3200_v3 = vadd.f32 %v2804_v21, %v284_v0  ;;  %v1053_v58 = vmul.f32 %v1052_v7, %v2975_v22  ;;  %v988_v5 = vand.u32 2147483647, %v3153_v41  ;;  %v1091_v23 = vmul.f32 %v1090_v1, %v3720_v33 }
 0x172   :  { %v981_v6 = vsub.f32 1.0, %v980_v18  ;;  %v1017_v19 = vmul.f32 %v1016_v11, %v2887_v52  ;;  %v953_v14 = vmul.f32 %v952_v27, %v2982_v42  ;;  %v990_v24 = vand.u32 2147483648, %v3153_v41 }
 0x173   :  { %v1054_v57 = vadd.f32 0.112945676, %v1053_v58  ;;  %v1130_v59 = vadd.f32 0.001143296, %v1129_v45  ;;  %vm985_vm13 = vweird.f32 %v2147_v56  ;;  %v1092_v46 = vadd.f32 0.014752088, %v1091_v23  ;;  %v1795_v23 = vpop.f32.mrf.mxu1 }
 0x174   :  { %v982_v15 = vmul.f32 %v2147_v56, %v981_v6  ;;  %v3208_v61 = vadd.f32 1.0, %v1017_v19  ;;  %v1405_v0 = vadd.f32 0.18741608, %v1404_v25  ;;  %v1443_v7 = vadd.f32 0.05243302, %v1442_v26 }
 0x175   :  { %v1480_v8 = vmul.f32 %v1479_v50, %v3171_v47  ;;  %v1055_v18 = vmul.f32 %v1054_v57, %v2975_v22  ;;  %vm984_vm14 = vweird.f32 %v3153_v41  ;;  %v3214_v42 = vmul.f32 0.70710677, %v3200_v3 }
 0x176   :  { %v983_v52 = vadd.f32 %v2147_v56, %v982_v15  ;;  %2148 = vrcp.f32 %v3208_v61  ;;  %v2025_v27 = vclamps-f32 %v953_v14, 1.0  ;;  %vm986_vm15 = vmor %vm984_vm14, %vm985_vm13  ;;  %v991_v1 = vor.u32 1.1754944e-38, %v990_v24 }
 0x177   :  { %v1056_v45 = vadd.f32 0.4994258, %v1055_v18  ;;  %v1131_v11 = vmul.f32 %v1130_v59, %v3724_v36  ;;  %v1327_v25 = vadd.f32 1.1283791, %v1326_v17  ;;  %vm989_vm0 = vcmp.eq.f32.partialorder %v988_v5, 8.507059e+37 }
 0x178   :  { %v987_v26 = vsel %vm986_vm15, %v2147_v56, %v983_v52  ;;  %v1093_v50 = vmul.f32 %v1092_v46, %v3720_v33  ;;  %v1366_v58 = vmul.f32 %v1365_v38, %v3074_v32  ;;  %v1406_v41 = vmul.f32 %v1405_v0, %v3089_v53  ;;  %v287_v52 = vpop.f32.mrf.mxu3 }
 0x179   :  { %v1444_v6 = vmul.f32 %v1443_v7, %v3122_v62  ;;  %v992_v19 = vsel %vm989_vm0, %v991_v1, %v987_v26  ;;  %v1481_v57 = vadd.f32 0.0036580483, %v1480_v8  ;;  %v1057_v24 = vmul.f32 %v1056_v45, %v2975_v22 }
 0x17a   :  { %v993_v14 = vmul.f32 %v992_v19, %v3035_v29  ;;  %v1796_v59 = vadd.f32 %v3165_v54, %v1795_v23  ;;  %v3226_v56 = vmul.f32 %v1047_v28, %v2943_v34  ;;  %v1650_v17 = vadd.f32 1.0, %v2025_v27 }
 0x17b   :  { %v1516_v38 = vmul.f32 %v3214_v42, %v3214_v42  ;;  %v1132_v5 = vadd.f32 0.014752088, %v1131_v11  ;;  %v3231_v46 = vmul.f32 %v1327_v25, %v2989_v40  ;;  %v3233_v7 = vadd.f32 1.0, %v1057_v24  ;;  %v3725_v40 = vld [vmem:[#allocation11_spill] sm:$0xff] }
 0x17c   :  { %v2149_v15 = vpop.eup %2148  ;;  %v2026_v0 = vclamps-f32 %v993_v14, 1.0  ;;  %1874 = vst [vmem:[#allocation2 + $0x8] sm:$0xff] %v1796_v59  ;;  %v1094_v29 = vadd.f32 0.112945676, %v1093_v50  ;;  %v1367_v22 = vadd.f32 1.1283791, %v1366_v58  ;;  %v1482_v28 = vmul.f32 %v1481_v57, %v3171_v47  ;;  %v1798_v57 = vpop.f32.mrf.mxu1 }
 0x17d   :  { %v1407_v8 = vadd.f32 1.1283791, %v1406_v41  ;;  %v1445_v18 = vadd.f32 0.18741608, %v1444_v6  ;;  %v1020_v34 = vmul.f32 %v2149_v15, %v3208_v61  ;;  %v3238_v1 = vadd.f32 %v2804_v21, %v287_v52 }
 0x17e   :  { %v1651_v27 = vadd.f32 1.0, %v2026_v0  ;;  %2150 = vrcp.f32 %v3233_v7  ;;  %v1682_v45 = vmul.f32 %v1650_v17, %v3725_v40  ;;  %v3242_v11 = vmin.f32 %v1516_v38, 16.0 }
 0x17f   :  { %v1021_v25 = vsub.f32 1.0, %v1020_v34  ;;  %v1133_v26 = vmul.f32 %v1132_v5, %v3724_v36  ;;  %v1030_v58 = vand.u32 2147483648, %v3208_v61  ;;  %v1095_v41 = vmul.f32 %v1094_v29, %v3720_v33 }
 0x180   :  { %v1683_v50 = vmul.f32 %v1651_v27, %v2972_v9  ;;  %v1169_v6 = vmul.f32 3.8918573e-05, %v2752_v48  ;;  %v1518_v21 = vmul.f32 2.1237322e-06, %v3242_v11  ;;  %vm1025_vm1 = vweird.f32 %v2149_v15 }
 0x181   :  { %v1022_v19 = vmul.f32 %v2149_v15, %v1021_v25  ;;  %v1028_v23 = vand.u32 2147483647, %v3208_v61  ;;  %v3252_v24 = vmul.f32 0.70710677, %v3238_v1  ;;  %v1799_v59 = vadd.f32 %v3165_v54, %v1798_v57 }
 0x182   :  { %v1707_v14 = vpack.c.bf16 %v1683_v50, %v1682_v45  ;;  %v1096_v9 = vadd.f32 0.4994258, %v1095_v41  ;;  %v1446_v17 = vmul.f32 %v1445_v18, %v3122_v62  ;;  %vm1024_vm2 = vweird.f32 %v3208_v61 }
 0x183   :  { %v1023_v38 = vadd.f32 %v2149_v15, %v1022_v19  ;;  %v1134_v5 = vadd.f32 0.112945676, %v1133_v26  ;;  %v1483_v29 = vadd.f32 0.05243302, %v1482_v28  ;;  %vm1026_vm3 = vmor %vm1024_vm2, %vm1025_vm1  ;;  %v1031_v52 = vor.u32 1.1754944e-38, %v1030_v58  ;;  %1875 = vst [vmem:[#allocation2 + $0x10] sm:$0xff] %v1799_v59 }
 0x184   :  { %v2151_v0 = vpop.eup %2150  ;;  %1827 = vmatmul.bf16.gmra.mxu1 %v1707_v14  ;;  %v1097_v34 = vmul.f32 %v1096_v9, %v3720_v33  ;;  %v1170_v27 = vadd.f32 0.001143296, %v1169_v6  ;;  %v1519_v40 = vadd.f32 0.00028619796, %v1518_v21  ;;  %vm1029_vm4 = vcmp.eq.f32.partialorder %v1028_v23, 8.507059e+37 }
 0x185   :  { %v1027_v45 = vsel %vm1026_vm3, %v2149_v15, %v1023_v38  ;;  %v1060_v25 = vmul.f32 %v2151_v0, %v3233_v7  ;;  %v1556_v18 = vmul.f32 %v3252_v24, %v3252_v24  ;;  %v1135_v26 = vmul.f32 %v1134_v5, %v3724_v36 }
 0x186   :  { %v1032_v50 = vsel %vm1029_vm4, %v1031_v52, %v1027_v45  ;;  %v1098_v61 = vadd.f32 1.0, %v1097_v34  ;;  %v3263_v28 = vmul.f32 0.5, %v3050_v2  ;;  %v1070_v41 = vand.u32 2147483648, %v3233_v7 }
 0x187   :  { %v1061_v58 = vsub.f32 1.0, %v1060_v25  ;;  %v1171_v33 = vmul.f32 %v1170_v27, %v2752_v48  ;;  %v3268_v15 = vmul.f32 %v1367_v22, %v3047_v35  ;;  %v3271_v6 = vmul.f32 %v1407_v8, %v3064_v10 }
 0x188   :  { %v1033_v21 = vmul.f32 %v1032_v50, %v3178_v30  ;;  %2152 = vrcp.f32 %v1098_v61  ;;  %v3274_v19 = vadd.f32 1.1283791, %v1446_v17  ;;  %vm1065_vm5 = vweird.f32 %v2151_v0  ;;  %v1800_v30 = vpop.f32.mrf.mxu1 }
 0x189   :  { %v1062_v23 = vmul.f32 %v2151_v0, %v1061_v58  ;;  %v1068_v2 = vand.u32 2147483647, %v3233_v7  ;;  %v3278_v57 = vmul.f32 %v1483_v29, %v3171_v47  ;;  %v1520_v14 = vmul.f32 %v1519_v40, %v3242_v11 }
 0x18a   :  { %v3281_v59 = vmin.f32 %v1556_v18, 16.0  ;;  %v1136_v35 = vadd.f32 0.4994258, %v1135_v26  ;;  %vm1064_vm6 = vweird.f32 %v3233_v7  ;;  %v1071_v10 = vor.u32 1.1754944e-38, %v1070_v41 }
 0x18b   :  { %v1063_v22 = vadd.f32 %v2151_v0, %v1062_v23  ;;  %v1172_v8 = vadd.f32 0.014752088, %v1171_v33  ;;  %v2027_v9 = vclamps-f32 %v1033_v21, 1.0  ;;  %vm1066_vm7 = vmor %vm1064_vm6, %vm1065_vm5  ;;  %v1801_v38 = vadd.f32 %v3165_v54, %v1800_v30 }
 0x18c   :  { %v1137_v17 = vmul.f32 %v1136_v35, %v3724_v36  ;;  %v1209_v5 = vmul.f32 3.8918573e-05, %v2842_v37  ;;  %vm1069_vm8 = vcmp.eq.f32.partialorder %v1068_v2, 8.507059e+37  ;;  %v1108_v52 = vand.u32 2147483647, %v1098_v61 }
 0x18d   :  { %v1067_v29 = vsel %vm1066_vm7, %v2151_v0, %v1063_v22  ;;  %v1173_v34 = vmul.f32 %v1172_v8, %v2752_v48  ;;  %1876 = vst [vmem:[#allocation2 + $0x18] sm:$0xff] %v1801_v38  ;;  %v1249_v25 = vmul.f32 3.8918573e-05, %v2889_v44  ;;  %v1110_v50 = vand.u32 2147483648, %v1098_v61 }
 0x18e   :  { %v2153_v27 = vpop.eup %2152  ;;  %v1072_v40 = vsel %vm1069_vm8, %v1071_v10, %v1067_v29  ;;  %v3288_v45 = vadd.f32 1.0, %v1137_v17  ;;  %v1210_v7 = vadd.f32 0.001143296, %v1209_v5  ;;  %v1521_v58 = vadd.f32 0.0036580483, %v1520_v14 }
 0x18f   :  { %v1073_v18 = vmul.f32 %v1072_v40, %v3226_v56  ;;  %v1100_v36 = vmul.f32 %v2153_v27, %v1098_v61  ;;  %v1174_v26 = vadd.f32 0.112945676, %v1173_v34  ;;  %v1652_v41 = vadd.f32 1.0, %v2027_v9 }
 0x190   :  { %vm1104_vm9 = vweird.f32 %v1098_v61  ;;  %2154 = vrcp.f32 %v3288_v45  ;;  %vm1105_vm10 = vweird.f32 %v2153_v27  ;;  %v1558_v23 = vmul.f32 2.1237322e-06, %v3281_v59  ;;  %v1803_v30 = vpop.f32.mrf.mxu1 }
 0x191   :  { %v2028_v0 = vclamps-f32 %v1073_v18, 1.0  ;;  %v1101_v33 = vsub.f32 1.0, %v1100_v36  ;;  %v1175_v21 = vmul.f32 %v1174_v26, %v2752_v48  ;;  %vm3295_vm11 = vcmp.eq.f32.partialorder %v1108_v52, 8.507059e+37  ;;  %vm3302_vm12 = vmor %vm1104_vm9, %vm1105_vm10 }
 0x192   :  { %v1211_v56 = vmul.f32 %v1210_v7, %v2842_v37  ;;  %v1250_v35 = vadd.f32 0.001143296, %v1249_v25  ;;  %v1111_v10 = vor.u32 1.1754944e-38, %v1110_v50  ;;  %v1684_v9 = vmul.f32 %v1652_v41, %v3000_v12 }
 0x193   :  { %v1653_v22 = vadd.f32 1.0, %v2028_v0  ;;  %v1102_v14 = vmul.f32 %v2153_v27, %v1101_v33  ;;  %v1176_v8 = vadd.f32 0.4994258, %v1175_v21  ;;  %v1804_v38 = vadd.f32 %v3165_v54, %v1803_v30  ;;  %v3730_v33 = vld [vmem:[#allocation9_spill] sm:$0xff] }
 0x194   :  { %v1212_v5 = vadd.f32 0.014752088, %v1211_v56  ;;  %v1251_v29 = vmul.f32 %v1250_v35, %v2889_v44  ;;  %v1289_v7 = vmul.f32 3.8918573e-05, %v2965_v60  ;;  %vm1144_vm13 = vweird.f32 %v3288_v45 }
 0x195   :  { %v1685_v52 = vmul.f32 %v1653_v22, %v3079_v4  ;;  %v1103_v34 = vadd.f32 %v2153_v27, %v1102_v14  ;;  %v1177_v40 = vmul.f32 %v1176_v8, %v2752_v48  ;;  %v1148_v12 = vand.u32 2147483647, %v3288_v45  ;;  %1877 = vst [vmem:[#allocation2 + $0x20] sm:$0xff] %v1804_v38 }
 0x196   :  { %v2155_v25 = vpop.eup %2154  ;;  %v1213_v61 = vmul.f32 %v1212_v5, %v2842_v37  ;;  %v1252_v18 = vadd.f32 0.014752088, %v1251_v29  ;;  %v1150_v26 = vand.u32 2147483648, %v3288_v45  ;;  %v1290_v22 = vadd.f32 0.001143296, %v1289_v7 }
 0x197   :  { %v1708_v36 = vpack.c.bf16 %v1685_v52, %v1684_v9  ;;  %v1107_v50 = vsel %vm3302_vm12, %v2153_v27, %v1103_v34  ;;  %v1140_v4 = vmul.f32 %v2155_v25, %v3288_v45  ;;  %vm1145_vm14 = vweird.f32 %v2155_v25 }
 0x198   :  { %v1112_v48 = vsel %vm3295_vm11, %v1111_v10, %v1107_v50  ;;  %v3320_v41 = vadd.f32 1.0, %v1177_v40  ;;  %v1214_v0 = vadd.f32 0.112945676, %v1213_v61  ;;  %v1253_v35 = vmul.f32 %v1252_v18, %v2889_v44  ;;  %vm3333_vm15 = vmor %vm1144_vm13, %vm1145_vm14  ;;  %v1805_v45 = vpop.f32.mrf.mxu1 }
 0x199   :  { %1832 = vmatmul.bf16.vlgmr.msra.gmra.mxu2 %v1708_v36  ;;  %v1113_v21 = vmul.f32 %v1112_v48, %v3730_v33  ;;  %v1141_v56 = vsub.f32 1.0, %v1140_v4  ;;  %v3325_v27 = vadd.f32 0.18741608, %v3278_v57  ;;  %v1522_v14 = vmul.f32 %v1521_v58, %v3242_v11 }
 0x19a   :  { %v1559_v30 = vadd.f32 0.00028619796, %v1558_v23  ;;  %2156 = vrcp.f32 %v3320_v41  ;;  %v1215_v8 = vmul.f32 %v1214_v0, %v2842_v37  ;;  %v1254_v9 = vadd.f32 0.112945676, %v1253_v35 }
 0x19b   :  { %v2029_v2 = vclamps-f32 %v1113_v21, 1.0  ;;  %v1142_v10 = vmul.f32 %v2155_v25, %v1141_v56  ;;  %vm3337_vm0 = vcmp.eq.f32.partialorder %v1148_v12, 8.507059e+37  ;;  %v1151_v58 = vor.u32 1.1754944e-38, %v1150_v26 }
 0x19c   :  { %v1291_v23 = vmul.f32 %v1290_v22, %v2965_v60  ;;  %v1329_v38 = vmul.f32 3.8918573e-05, %v3028_v13  ;;  %v1188_v29 = vand.u32 2147483647, %v3320_v41  ;;  %v1216_v52 = vadd.f32 0.4994258, %v1215_v8 }
 0x19d   :  { %v1143_v5 = vadd.f32 %v2155_v25, %v1142_v10  ;;  %v1255_v34 = vmul.f32 %v1254_v9, %v2889_v44  ;;  %vm1184_vm1 = vweird.f32 %v3320_v41  ;;  %v1369_v12 = vmul.f32 3.8918573e-05, %v3074_v32 }
 0x19e   :  { %v1292_v40 = vadd.f32 0.014752088, %v1291_v23  ;;  %v1330_v7 = vadd.f32 0.001143296, %v1329_v38  ;;  %v1654_v18 = vadd.f32 1.0, %v2029_v2  ;;  %v1217_v36 = vmul.f32 %v1216_v52, %v2842_v37  ;;  %v289_v38 = vpop.f32.mrf.mxu3 }
 0x19f   :  { %v1147_v61 = vsel %vm3333_vm15, %v2155_v25, %v1143_v5  ;;  %v1806_v50 = vadd.f32 %v3165_v54, %v1805_v45  ;;  %v1256_v48 = vadd.f32 0.4994258, %v1255_v34  ;;  %v1190_v25 = vand.u32 2147483648, %v3320_v41 }
 0x1a0   :  { %v2157_v4 = vpop.eup %2156  ;;  %v1152_v26 = vsel %vm3337_vm0, %v1151_v58, %v1147_v61  ;;  %v1293_v0 = vmul.f32 %v1292_v40, %v2965_v60  ;;  %v1331_v33 = vmul.f32 %v1330_v7, %v3028_v13  ;;  %v3358_v35 = vadd.f32 1.0, %v1217_v36  ;;  %v3738_v61 = vld [vmem:[#allocation8_spill] sm:$0xff] }
 0x1a1   :  { %v1153_v21 = vmul.f32 %v1152_v26, %v2928_v31  ;;  %v1180_v56 = vmul.f32 %v2157_v4, %v3320_v41  ;;  %1878 = vst [vmem:[#allocation2 + $0x28] sm:$0xff] %v1806_v50  ;;  %v1257_v37 = vmul.f32 %v1256_v48, %v2889_v44  ;;  %v1370_v10 = vadd.f32 0.001143296, %v1369_v12  ;;  %v3735_v31 = vld [vmem:[#allocation7_spill] sm:$0xff]  ;;  %v1808_v12 = vpop.f32.mrf.mxu1  ;;  %v2181_v41 = vld [vmem:[%s3687_s2] ss:$0 sm:$0xff] }
 0x1a2   :  { %v1294_v22 = vadd.f32 0.112945676, %v1293_v0  ;;  %v1332_v2 = vadd.f32 0.014752088, %v1331_v33  ;;  %vm1185_vm2 = vweird.f32 %v2157_v4  ;;  %2158 = vrcp.f32 %v3358_v35 }
 0x1a3   :  { %v2030_v8 = vclamps-f32 %v1153_v21, 1.0  ;;  %v1181_v9 = vsub.f32 1.0, %v1180_v56  ;;  %v1560_v17 = vmul.f32 %v1559_v30, %v3281_v59  ;;  %v1686_v57 = vmul.f32 %v1654_v18, %v3735_v31  ;;  %vm3373_vm3 = vmor %vm1184_vm1, %vm1185_vm2 }
 0x1a4   :  { %v3364_v58 = vadd.f32 1.0, %v1257_v37  ;;  %v1295_v23 = vmul.f32 %v1294_v22, %v2965_v60  ;;  %v1333_v44 = vmul.f32 %v1332_v2, %v3028_v13  ;;  %v1371_v34 = vmul.f32 %v1370_v10, %v3074_v32 }
 0x1a5   :  { %v1655_v5 = vadd.f32 1.0, %v2030_v8  ;;  %v1182_v52 = vmul.f32 %v2157_v4, %v1181_v9  ;;  %v3369_v45 = vadd.f32 0.05243302, %v1522_v14  ;;  %v1191_v30 = vor.u32 1.1754944e-38, %v1190_v25 }
 0x1a6   :  { %v1230_v7 = vand.u32 2147483648, %v3358_v35  ;;  %2160 = vrcp.f32 %v3364_v58  ;;  %vm1189_vm4 = vcmp.eq.f32.partialorder %v1188_v29, 8.507059e+37  ;;  %v1809_v50 = vadd.f32 %v3165_v54, %v1808_v12 }
 0x1a7   :  { %v1687_v18 = vmul.f32 %v1655_v5, %v3738_v61  ;;  %v1183_v36 = vadd.f32 %v2157_v4, %v1182_v52  ;;  %v3381_v14 = vadd.f32 0.0036580483, %v1560_v17  ;;  %v3386_v26 = vadd.f32 %v2181_v41, %v289_v38 }
 0x1a8   :  { %v1296_v48 = vadd.f32 0.4994258, %v1295_v23  ;;  %v1334_v0 = vadd.f32 0.112945676, %v1333_v44  ;;  %v2159_v33 = vpop.eup %2158  ;;  %vm1224_vm5 = vweird.f32 %v3358_v35  ;;  %1879 = vst [vmem:[#allocation2 + $0x30] sm:$0xff] %v1809_v50  ;;  %v1231_v2 = vor.u32 1.1754944e-38, %v1230_v7 }
 0x1a9   :  { %v1709_v21 = vpack.c.bf16 %v1687_v18, %v1686_v57  ;;  %v1187_v56 = vsel %vm3373_vm3, %v2157_v4, %v1183_v36  ;;  %v1372_v29 = vadd.f32 0.014752088, %v1371_v34  ;;  %v1220_v37 = vmul.f32 %v2159_v33, %v3358_v35  ;;  %v1810_v52 = vpop.f32.mrf.mxu1 }
 0x1aa   :  { %v1192_v25 = vsel %vm1189_vm4, %v1191_v30, %v1187_v56  ;;  %v1228_v22 = vand.u32 2147483647, %v3358_v35  ;;  %v1297_v8 = vmul.f32 %v1296_v48, %v2965_v60  ;;  %v1335_v9 = vmul.f32 %v1334_v0, %v3028_v13 }
 0x1ab   :  { %1837 = vmatmul.bf16.gmra.mxu2 %v1709_v21  ;;  %v1193_v10 = vmul.f32 %v1192_v25, %v2940_v51  ;;  %v1373_v17 = vmul.f32 %v1372_v29, %v3074_v32  ;;  %v1221_v31 = vsub.f32 1.0, %v1220_v37  ;;  %vm1225_vm6 = vweird.f32 %v2159_v33 }
 0x1ac   :  { %v2161_v4 = vpop.eup %2160  ;;  %vm1264_vm7 = vweird.f32 %v3364_v58  ;;  %v1409_v57 = vmul.f32 3.8918573e-05, %v3089_v53  ;;  %v1268_v38 = vand.u32 2147483647, %v3364_v58  ;;  %v1270_v5 = vand.u32 2147483648, %v3364_v58  ;;  %vm3406_vm8 = vmor %vm1224_vm5, %vm1225_vm6 }
 0x1ad   :  { %v1260_v23 = vmul.f32 %v2161_v4, %v3364_v58  ;;  %v3402_v51 = vadd.f32 1.0, %v1297_v8  ;;  %v1222_v60 = vmul.f32 %v2159_v33, %v1221_v31  ;;  %v1336_v44 = vadd.f32 0.4994258, %v1335_v9 }
 0x1ae   :  { %v1374_v34 = vadd.f32 0.112945676, %v1373_v17  ;;  %v1410_v40 = vadd.f32 0.001143296, %v1409_v57  ;;  %v2031_v30 = vclamps-f32 %v1193_v10, 1.0  ;;  %vm1265_vm9 = vweird.f32 %v2161_v4 }
 0x1af   :  { %v1261_v12 = vsub.f32 1.0, %v1260_v23  ;;  %2162 = vrcp.f32 %v3402_v51  ;;  %v3412_v61 = vmul.f32 0.70710677, %v3386_v26  ;;  %v1223_v18 = vadd.f32 %v2159_v33, %v1222_v60  ;;  %vm3422_vm11 = vmor %vm1264_vm7, %vm1265_vm9  ;;  %v3745_v60 = vld [vmem:[#allocation10_spill] sm:$0xff] }
 0x1b0   :  { %vm1229_vm10 = vcmp.eq.f32.partialorder %v1228_v22, 8.507059e+37  ;;  %v1811_v36 = vadd.f32 %v3165_v54, %v1810_v52  ;;  %v1337_v41 = vmul.f32 %v1336_v44, %v3028_v13  ;;  %v1375_v35 = vmul.f32 %v1374_v34, %v3074_v32 }
 0x1b1   :  { %v1262_v50 = vmul.f32 %v2161_v4, %v1261_v12  ;;  %v1449_v48 = vmul.f32 3.8918573e-05, %v3122_v62  ;;  %v1227_v0 = vsel %vm3406_vm8, %v2159_v33, %v1223_v18  ;;  %vm3426_vm12 = vcmp.eq.f32.partialorder %v1268_v38, 8.507059e+37 }
 0x1b2   :  { %v1271_v29 = vor.u32 1.1754944e-38, %v1270_v5  ;;  %1880 = vst [vmem:[#allocation2 + $0x38] sm:$0xff] %v1811_v36  ;;  %v1411_v13 = vmul.f32 %v1410_v40, %v3089_v53  ;;  %v1232_v25 = vsel %vm1229_vm10, %v1231_v2, %v1227_v0  ;;  %v1656_v37 = vadd.f32 1.0, %v2031_v30 }
 0x1b3   :  { %v1263_v22 = vadd.f32 %v2161_v4, %v1262_v50  ;;  %v3431_v10 = vadd.f32 1.0, %v1337_v41  ;;  %v1233_v33 = vmul.f32 %v1232_v25, %v3006_v39  ;;  %vm1304_vm13 = vweird.f32 %v3402_v51 }
 0x1b4   :  { %v1376_v58 = vadd.f32 0.4994258, %v1375_v35  ;;  %v1412_v8 = vadd.f32 0.014752088, %v1411_v13  ;;  %v1450_v31 = vadd.f32 0.001143296, %v1449_v48  ;;  %v1688_v52 = vmul.f32 %v1656_v37, %v3745_v60 }
 0x1b5   :  { %v2163_v9 = vpop.eup %2162  ;;  %v1267_v17 = vsel %vm3422_vm11, %v2161_v4, %v1263_v22  ;;  %2164 = vrcp.f32 %v3431_v10  ;;  %v1489_v57 = vmul.f32 3.8918573e-05, %v3171_v47  ;;  %v2032_v2 = vclamps-f32 %v1233_v33, 1.0  ;;  %v1813_v5 = vpop.f32.mrf.mxu1 }
 0x1b6   :  { %v1272_v23 = vsel %vm3426_vm12, %v1271_v29, %v1267_v17  ;;  %v1300_v38 = vmul.f32 %v2163_v9, %v3402_v51  ;;  %v1308_v39 = vand.u32 2147483647, %v3402_v51  ;;  %vm1305_vm14 = vweird.f32 %v2163_v9 }
 0x1b7   :  { %v1310_v44 = vand.u32 2147483648, %v3402_v51  ;;  %v1814_v4 = vadd.f32 %v3165_v54, %v1813_v5  ;;  %v1657_v34 = vadd.f32 1.0, %v2032_v2  ;;  %v1377_v30 = vmul.f32 %v1376_v58, %v3074_v32  ;;  %vm3458_vm15 = vmor %vm1304_vm13, %vm1305_vm14 }
 0x1b8   :  { %v1301_v40 = vsub.f32 1.0, %v1300_v38  ;;  %v1413_v7 = vmul.f32 %v1412_v8, %v3089_v53  ;;  %v1596_v12 = vmul.f32 %v3412_v61, %v3412_v61  ;;  %v1273_v18 = vmul.f32 %v1272_v23, %v3113_v63 }
 0x1b9   :  { %1881 = vst [vmem:[#allocation2 + $0x40] sm:$0xff] %v1814_v4  ;;  %v1451_v36 = vmul.f32 %v1450_v31, %v3122_v62  ;;  %v1490_v50 = vadd.f32 0.001143296, %v1489_v57  ;;  %v1689_v41 = vmul.f32 %v1657_v34, %v2948_v55  ;;  %v3453_v48 = vadd.f32 1.0, %v1377_v30 }
 0x1ba   :  { %v1302_v35 = vmul.f32 %v2163_v9, %v1301_v40  ;;  %v1414_v0 = vadd.f32 0.112945676, %v1413_v7  ;;  %vm3462_vm0 = vcmp.eq.f32.partialorder %v1308_v39, 8.507059e+37  ;;  %v1311_v56 = vor.u32 1.1754944e-38, %v1310_v44 }
 0x1bb   :  { %v2165_v21 = vpop.eup %2164  ;;  %vm1344_vm1 = vweird.f32 %v3431_v10  ;;  %v1452_v55 = vadd.f32 0.014752088, %v1451_v36  ;;  %v1710_v29 = vpack.c.bf16 %v1689_v41, %v1688_v52  ;;  %v1348_v37 = vand.u32 2147483647, %v3431_v10 }
 0x1bc   :  { %v1303_v13 = vadd.f32 %v2163_v9, %v1302_v35  ;;  %v1340_v25 = vmul.f32 %v2165_v21, %v3431_v10  ;;  %v2033_v22 = vclamps-f32 %v1273_v18, 1.0  ;;  %v1350_v51 = vand.u32 2147483648, %v3431_v10 }
 0x1bd   :  { %2166 = vrcp.f32 %v3453_v48  ;;  %v1491_v33 = vmul.f32 %v1490_v50, %v3171_v47  ;;  %1842 = vmatmul.bf16.gmra.mxu2 %v1710_v29  ;;  %v1815_v17 = vpop.f32.mrf.mxu1  ;;  %v1415_v31 = vmul.f32 %v1414_v0, %v3089_v53  ;;  %v1529_v57 = vmul.f32 3.8918573e-05, %v3242_v11 }
 0x1be   :  { %v1307_v58 = vsel %vm3458_vm15, %v2163_v9, %v1303_v13  ;;  %v1341_v8 = vsub.f32 1.0, %v1340_v25  ;;  %vm1345_vm2 = vweird.f32 %v2165_v21  ;;  %v1816_v23 = vadd.f32 %v3165_v54, %v1815_v17 }
 0x1bf   :  { %v1312_v2 = vsel %vm3462_vm0, %v1311_v56, %v1307_v58  ;;  %v1453_v38 = vmul.f32 %v1452_v55, %v3122_v62  ;;  %v3480_v39 = vmin.f32 %v1596_v12, 16.0  ;;  %v1416_v9 = vadd.f32 0.4994258, %v1415_v31  ;;  %vm3491_vm4 = vmor %vm1344_vm1, %vm1345_vm2 }
 0x1c0   :  { %v1313_v5 = vmul.f32 %v1312_v2, %v3187_v16  ;;  %v1342_v60 = vmul.f32 %v2165_v21, %v1341_v8  ;;  %v1524_v52 = vmul.f32 %v3369_v45, %v3242_v11  ;;  %vm3485_vm3 = vcmp.eq.f32.partialorder %v1348_v37, 8.507059e+37  ;;  %1882 = vst [vmem:[#allocation2 + $0x48] sm:$0xff] %v1816_v23  ;;  %v3754_v37 = vld [vmem:[#allocation13_spill] sm:$0xff] }
 0x1c1   :  { %v1454_v4 = vadd.f32 0.112945676, %v1453_v38  ;;  %v1492_v34 = vadd.f32 0.014752088, %v1491_v33  ;;  %v1417_v16 = vmul.f32 %v1416_v9, %v3089_v53  ;;  %v1530_v12 = vadd.f32 0.001143296, %v1529_v57 }
 0x1c2   :  { %v2034_v40 = vclamps-f32 %v1313_v5, 1.0  ;;  %v1343_v30 = vadd.f32 %v2165_v21, %v1342_v60  ;;  %v1658_v45 = vadd.f32 1.0, %v2033_v22  ;;  %v1351_v36 = vor.u32 1.1754944e-38, %v1350_v51  ;;  %v3755_v33 = vld [vmem:[#allocation14_spill] sm:$0xff] }
 0x1c3   :  { %v2167_v18 = vpop.eup %2166  ;;  %v1455_v50 = vmul.f32 %v1454_v4, %v3122_v62  ;;  %v1493_v41 = vmul.f32 %v1492_v34, %v3171_v47  ;;  %vm1384_vm5 = vweird.f32 %v3453_v48  ;;  %v1390_v10 = vand.u32 2147483648, %v3453_v48 }
 0x1c4   :  { %v1659_v35 = vadd.f32 1.0, %v2034_v40  ;;  %v1380_v0 = vmul.f32 %v2167_v18, %v3453_v48  ;;  %v1347_v32 = vsel %vm3491_vm4, %v2165_v21, %v1343_v30  ;;  %v1418_v63 = vadd.f32 1.0, %v1417_v16 }
 0x1c5   :  { %v1456_v53 = vadd.f32 0.4994258, %v1455_v50  ;;  %v1494_v56 = vadd.f32 0.112945676, %v1493_v41  ;;  %vm1385_vm6 = vweird.f32 %v2167_v18  ;;  %v1388_v29 = vand.u32 2147483647, %v3453_v48 }
 0x1c6   :  { %v1381_v55 = vsub.f32 1.0, %v1380_v0  ;;  %v1531_v13 = vmul.f32 %v1530_v12, %v3242_v11  ;;  %v1598_v25 = vmul.f32 2.1237322e-06, %v3480_v39  ;;  %v1690_v22 = vmul.f32 %v1658_v45, %v3754_v37  ;;  %vm3514_vm7 = vmor %vm1384_vm5, %vm1385_vm6 }
 0x1c7   :  { %2168 = vrcp.f32 %v1418_v63  ;;  %v1569_v51 = vmul.f32 3.8918573e-05, %v3281_v59  ;;  %v1691_v58 = vmul.f32 %v1659_v35, %v3755_v33  ;;  %v1352_v21 = vsel %vm3485_vm3, %v1351_v36, %v1347_v32 }
 0x1c8   :  { %v1382_v8 = vmul.f32 %v2167_v18, %v1381_v55  ;;  %v1457_v17 = vmul.f32 %v1456_v53, %v3122_v62  ;;  %v1391_v57 = vor.u32 1.1754944e-38, %v1390_v10  ;;  %v1495_v2 = vmul.f32 %v1494_v56, %v3171_v47 }
 0x1c9   :  { %v1532_v23 = vadd.f32 0.014752088, %v1531_v13  ;;  %v1609_v38 = vmul.f32 3.8918573e-05, %v3480_v39  ;;  %v3520_v5 = vadd.f32 0.18741608, %v1524_v52  ;;  %v1353_v62 = vmul.f32 %v1352_v21, %v3231_v46 }
 0x1ca   :  { %v1383_v60 = vadd.f32 %v2167_v18, %v1382_v8  ;;  %vm1389_vm8 = vcmp.eq.f32.partialorder %v1388_v29, 8.507059e+37  ;;  %v3522_v9 = vadd.f32 1.0, %v1457_v17  ;;  %v1496_v44 = vadd.f32 0.4994258, %v1495_v2 }
 0x1cb   :  { %v1533_v48 = vmul.f32 %v1532_v23, %v3242_v11  ;;  %v1570_v4 = vadd.f32 0.001143296, %v1569_v51  ;;  %v1599_v34 = vadd.f32 0.00028619796, %v1598_v25  ;;  %v1711_v40 = vpack.c.bf16 %v1691_v58, %v1690_v22 }
 0x1cc   :  { %v1387_v30 = vsel %vm3514_vm7, %v2167_v18, %v1383_v60  ;;  %2170 = vrcp.f32 %v3522_v9  ;;  %v1428_v16 = vand.u32 2147483647, %v1418_v63  ;;  %v1497_v12 = vmul.f32 %v1496_v44, %v3171_v47 }
 0x1cd   :  { %v2169_v7 = vpop.eup %2168  ;;  %v1392_v52 = vsel %vm1389_vm8, %v1391_v57, %v1387_v30  ;;  %v1610_v45 = vadd.f32 0.001143296, %v1609_v38  ;;  %1847 = vmatmul.bf16.gmra.mxu2 %v1711_v40  ;;  %v1430_v50 = vand.u32 2147483648, %v1418_v63  ;;  %v1534_v41 = vadd.f32 0.112945676, %v1533_v48 }
 0x1ce   :  { %v1393_v46 = vmul.f32 %v1392_v52, %v3268_v15  ;;  %v1420_v36 = vmul.f32 %v2169_v7, %v1418_v63  ;;  %v2035_v35 = vclamps-f32 %v1353_v62, 1.0  ;;  %vm1424_vm9 = vweird.f32 %v1418_v63 }
 0x1cf   :  { %v3531_v0 = vadd.f32 1.0, %v1497_v12  ;;  %v1571_v18 = vmul.f32 %v1570_v4, %v3281_v59  ;;  %vm1425_vm10 = vweird.f32 %v2169_v7  ;;  %v1535_v53 = vmul.f32 %v1534_v41, %v3242_v11  ;;  %v3764_v41 = vld [vmem:[#allocation15_spill] sm:$0xff] }
 0x1d0   :  { %v2036_v10 = vclamps-f32 %v1393_v46, 1.0  ;;  %v1421_v32 = vsub.f32 1.0, %v1420_v36  ;;  %v1600_v56 = vmul.f32 %v1599_v34, %v3480_v39  ;;  %vm3536_vm11 = vcmp.eq.f32.partialorder %v1428_v16, 8.507059e+37  ;;  %vm3543_vm12 = vmor %vm1424_vm9, %vm1425_vm10 }
 0x1d1   :  { %2172 = vrcp.f32 %v3531_v0  ;;  %v1611_v15 = vmul.f32 %v1610_v45, %v3480_v39  ;;  %v1431_v25 = vor.u32 1.1754944e-38, %v1430_v50  ;;  %v1536_v37 = vadd.f32 0.4994258, %v1535_v53 }
 0x1d2   :  { %v2171_v29 = vpop.eup %2170  ;;  %v1422_v13 = vmul.f32 %v2169_v7, %v1421_v32  ;;  %v1572_v22 = vadd.f32 0.014752088, %v1571_v18  ;;  %v1660_v51 = vadd.f32 1.0, %v2035_v35  ;;  %vm1464_vm13 = vweird.f32 %v3522_v9 }
 0x1d3   :  { %v1460_v58 = vmul.f32 %v2171_v29, %v3522_v9  ;;  %v1470_v21 = vand.u32 2147483648, %v3522_v9  ;;  %v1661_v8 = vadd.f32 1.0, %v2036_v10  ;;  %v1537_v31 = vmul.f32 %v1536_v37, %v3242_v11 }
 0x1d4   :  { %v1423_v17 = vadd.f32 %v2169_v7, %v1422_v13  ;;  %v1573_v57 = vmul.f32 %v1572_v22, %v3281_v59  ;;  %vm1465_vm14 = vweird.f32 %v2171_v29  ;;  %v1468_v63 = vand.u32 2147483647, %v3522_v9 }
 0x1d5   :  { %v1461_v2 = vsub.f32 1.0, %v1460_v58  ;;  %v1612_v23 = vadd.f32 0.014752088, %v1611_v15  ;;  %v1601_v38 = vadd.f32 0.0036580483, %v1600_v56  ;;  %v3555_v62 = vadd.f32 1.0, %v1537_v31  ;;  %vm3568_vm15 = vmor %vm1464_vm13, %vm1465_vm14 }
 0x1d6   :  { %v1427_v60 = vsel %vm3543_vm12, %v2169_v7, %v1423_v17  ;;  %v1574_v44 = vadd.f32 0.112945676, %v1573_v57  ;;  %v1692_v4 = vmul.f32 %v1660_v51, %v3118_v43  ;;  %v1471_v30 = vor.u32 1.1754944e-38, %v1470_v21  ;;  %v3598_v51 = vld [vmem:[%s3689_s4] ss:$0 sm:$0xff]  ;;  %s2209_s4 = smov [#allocation2]  }
 0x1d7   :  { %v3557_v48 = vpop.eup %2172  ;;  %v1818_v34 = vpop.f32.mrf.mxu1  ;;  %v1462_v40 = vmul.f32 %v2171_v29, %v1461_v2  ;;  %v1613_v52 = vmul.f32 %v1612_v23, %v3480_v39  ;;  %v1693_v16 = vmul.f32 %v1661_v8, %v3149_v49  ;;  %v1432_v45 = vsel %vm3536_vm11, %v1431_v25, %v1427_v60  ;;  %v3769_v7 = vld [vmem:[#allocation17_spill] sm:$0xff]  ;;  %s1909_s25 = sshll.u32 %s2209_s4, 4  ;;  %s1910_s25 = int_to_ptr.vmem [resolvable:$true] %s1909_s25 }
 0x1d8   :  { %v1819_v12 = vadd.f32 %v3165_v54, %v1818_v34  ;;  %v1500_v43 = vmul.f32 %v3557_v48, %v3531_v0  ;;  %v1448_v46 = vmul.f32 %v3274_v19, %v3100_v20  ;;  %vm1469_vm0 = vcmp.eq.f32.partialorder %v1468_v63, 8.507059e+37 }
 0x1d9   :  { %v1463_v36 = vadd.f32 %v2171_v29, %v1462_v40  ;;  %2174 = vrcp.f32 %v3555_v62  ;;  %v1562_v49 = vmul.f32 %v3381_v14, %v3281_v59  ;;  %v1602_v54 = vmul.f32 %v1601_v38, %v3480_v39 }
 0x1da   :  { %1883 = vst [vmem:[#allocation2 + $0x50] sm:$0xff] %v1819_v12  ;;  %v1501_v9 = vsub.f32 1.0, %v1500_v43  ;;  %v1575_v50 = vmul.f32 %v1574_v44, %v3281_v59  ;;  %v319_v35 = vmul.f32 0.5, %v3764_v41  ;;  %v1433_v18 = vmul.f32 %v1432_v45, %v3271_v6 }
 0x1db   :  { %v1467_v20 = vsel %vm3568_vm15, %v2171_v29, %v1463_v36  ;;  %v1614_v19 = vadd.f32 0.112945676, %v1613_v52  ;;  %v1486_v10 = vmul.f32 %v3325_v27, %v3171_v47  ;;  %v1526_v14 = vmul.f32 %v3520_v5, %v3242_v11 }
 0x1dc   :  { %v1712_v32 = vpack.c.bf16 %v1693_v16, %v1692_v4  ;;  %v1472_v53 = vsel %vm1469_vm0, %v1471_v30, %v1467_v20  ;;  %v1502_v55 = vmul.f32 %v3557_v48, %v1501_v9  ;;  %v1576_v15 = vadd.f32 0.4994258, %v1575_v50 }
 0x1dd   :  { %v1473_v56 = vmul.f32 %v1472_v53, %v1448_v46  ;;  %v1615_v13 = vmul.f32 %v1614_v19, %v3480_v39  ;;  %v1563_v25 = vadd.f32 0.05243302, %v1562_v49  ;;  %v1603_v6 = vadd.f32 0.05243302, %v1602_v54 }
 0x1de   :  { %1852 = vmatmul.bf16.gmra.mxu2 %v1712_v32  ;;  %vm1504_vm1 = vweird.f32 %v3531_v0  ;;  %v1508_v29 = vand.u32 2147483647, %v3531_v0  ;;  %v2037_v47 = vclamps-f32 %v1433_v18, 1.0  ;;  %vm1505_vm2 = vweird.f32 %v3557_v48 }
 0x1df   :  { %v2175_v37 = vpop.eup %2174  ;;  %v1820_v27 = vpop.f32.mrf.mxu1  ;;  %v1577_v11 = vmul.f32 %v1576_v15, %v3281_v59  ;;  %v1616_v5 = vadd.f32 0.4994258, %v1615_v13  ;;  %v2038_v22 = vclamps-f32 %v1473_v56, 1.0  ;;  %v1510_v58 = vand.u32 2147483648, %v3531_v0  ;;  %vm3610_vm3 = vmor %vm1504_vm1, %vm1505_vm2 }
 0x1e0   :  { %v1821_v33 = vadd.f32 %v3598_v51, %v1820_v27  ;;  %v1540_v21 = vmul.f32 %v2175_v37, %v3555_v62  ;;  %v1503_v8 = vadd.f32 %v3557_v48, %v1502_v55  ;;  %v1550_v17 = vand.u32 2147483648, %v3555_v62 }
 0x1e1   :  { %v3605_v31 = vadd.f32 1.0, %v1577_v11  ;;  %v1617_v57 = vmul.f32 %v1616_v5, %v3480_v39  ;;  %vm1544_vm4 = vweird.f32 %v3555_v62  ;;  %vm1545_vm5 = vweird.f32 %v2175_v37 }
 0x1e2   :  { %1884 = vst [vmem:[#allocation2 + $0x58] sm:$0xff] %v1821_v33  ;;  %v1541_v63 = vsub.f32 1.0, %v1540_v21  ;;  %v1548_v23 = vand.u32 2147483647, %v3555_v62  ;;  %v1487_v38 = vadd.f32 1.1283791, %v1486_v10  ;;  %v1564_v0 = vmul.f32 %v1563_v25, %v3281_v59  ;;  %vm3623_vm7 = vmor %vm1544_vm4, %vm1545_vm5 }
 0x1e3   :  { %v1527_v60 = vadd.f32 1.1283791, %v1526_v14  ;;  %v1662_v44 = vadd.f32 1.0, %v2037_v47  ;;  %2176 = vrcp.f32 %v3605_v31  ;;  %v1663_v4 = vadd.f32 1.0, %v2038_v22  ;;  %v3772_v33 = vld [vmem:[#allocation16_spill] sm:$0xff] }
 0x1e4   :  { %v1511_v34 = vor.u32 1.1754944e-38, %v1510_v58  ;;  %v1542_v40 = vmul.f32 %v2175_v37, %v1541_v63  ;;  %v3617_v30 = vadd.f32 1.0, %v1617_v57  ;;  %v1507_v52 = vsel %vm3610_vm3, %v3557_v48, %v1503_v8 }
 0x1e5   :  { %vm1509_vm6 = vcmp.eq.f32.partialorder %v1508_v29, 8.507059e+37  ;;  %v1551_v62 = vor.u32 1.1754944e-38, %v1550_v17  ;;  %v1604_v12 = vmul.f32 %v1603_v6, %v3480_v39  ;;  %vm1549_vm8 = vcmp.eq.f32.partialorder %v1548_v23, 8.507059e+37 }
 0x1e6   :  { %v1543_v45 = vadd.f32 %v2175_v37, %v1542_v40  ;;  %2178 = vrcp.f32 %v3617_v30  ;;  %v1488_v43 = vmul.f32 %v1487_v38, %v3769_v7  ;;  %v1528_v46 = vmul.f32 %v1527_v60, %v3214_v42 }
 0x1e7   :  { %v1694_v36 = vmul.f32 %v1662_v44, %v3263_v28  ;;  %v1823_v49 = vpop.f32.mrf.mxu1  ;;  %v1695_v48 = vmul.f32 %v1663_v4, %v319_v35  ;;  %v1512_v9 = vsel %vm1509_vm6, %v1511_v34, %v1507_v52  ;;  %v1565_v20 = vadd.f32 0.18741608, %v1564_v0 }
 0x1e8   :  { %v1824_v54 = vadd.f32 %v3598_v51, %v1823_v49  ;;  %v1547_v50 = vsel %vm3623_vm7, %v2175_v37, %v1543_v45  ;;  %v1605_v19 = vadd.f32 0.18741608, %v1604_v12  ;;  %v1513_v14 = vmul.f32 %v1512_v9, %v1488_v43 }
 0x1e9   :  { %v2177_v41 = vpop.eup %2176  ;;  %v1552_v18 = vsel %vm1549_vm8, %v1551_v62, %v1547_v50  ;;  %v1713_v42 = vpack.c.bf16 %v1695_v48, %v1694_v36  ;;  %v1566_v56 = vmul.f32 %v1565_v20, %v3281_v59  ;;  %vm1584_vm9 = vweird.f32 %v3605_v31 }
 0x1ea   :  { %1885 = vst [vmem:[#allocation2 + $0x60] sm:$0xff] %v1824_v54  ;;  %v1580_v10 = vmul.f32 %v2177_v41, %v3605_v31  ;;  %v1553_v53 = vmul.f32 %v1552_v18, %v1528_v46  ;;  %v1606_v55 = vmul.f32 %v1605_v19, %v3480_v39  ;;  %v2039_v13 = vclamps-f32 %v1513_v14, 1.0 }
 0x1eb   :  { %vm1585_vm10 = vweird.f32 %v2177_v41  ;;  %vm1624_vm11 = vweird.f32 %v3617_v30  ;;  %v1590_v47 = vand.u32 2147483648, %v3605_v31  ;;  %v1630_v59 = vand.u32 2147483648, %v3617_v30 }
 0x1ec   :  { %v2179_v32 = vpop.eup %2178  ;;  %v1581_v28 = vsub.f32 1.0, %v1580_v10  ;;  %v2040_v29 = vclamps-f32 %v1553_v53, 1.0  ;;  %vm3644_vm13 = vmor %vm1584_vm9, %vm1585_vm10  ;;  %v1588_v5 = vand.u32 2147483647, %v3605_v31  ;;  %v1628_v22 = vand.u32 2147483647, %v3617_v30 }
 0x1ed   :  { %v1620_v35 = vmul.f32 %v2179_v32, %v3617_v30  ;;  %vm1625_vm12 = vweird.f32 %v2179_v32  ;;  %v320_v58 = vmul.f32 0.5, %v3772_v33  ;;  %v321_v21 = vmul.f32 0.5, %v3200_v3 }
 0x1ee   :  { %1857 = vmatmul.bf16.gmra.mxu2 %v1713_v42  ;;  %v1582_v15 = vmul.f32 %v2177_v41, %v1581_v28  ;;  %vm3652_vm14 = vmor %vm1624_vm11, %vm1625_vm12  ;;  %v1567_v57 = vadd.f32 1.1283791, %v1566_v56  ;;  %v1607_v2 = vadd.f32 1.1283791, %v1606_v55  ;;  %v1664_v63 = vadd.f32 1.0, %v2039_v13 }
 0x1ef   :  { %v1825_v25 = vpop.f32.mrf.mxu1  ;;  %v1621_v6 = vsub.f32 1.0, %v1620_v35  ;;  %v1665_v23 = vadd.f32 1.0, %v2040_v29  ;;  %v1591_v38 = vor.u32 1.1754944e-38, %v1590_v47  ;;  %v1631_v60 = vor.u32 1.1754944e-38, %v1630_v59 }
 0x1f0   :  { %v1826_v37 = vadd.f32 %v3598_v51, %v1825_v25  ;;  %v1583_v39 = vadd.f32 %v2177_v41, %v1582_v15  ;;  %vm1589_vm15 = vcmp.eq.f32.partialorder %v1588_v5, 8.507059e+37  ;;  %vm1629_vm0 = vcmp.eq.f32.partialorder %v1628_v22, 8.507059e+37 }
 0x1f1   :  { %v1622_v27 = vmul.f32 %v2179_v32, %v1621_v6  ;;  %v1568_v3 = vmul.f32 %v1567_v57, %v3252_v24  ;;  %v1608_v4 = vmul.f32 %v1607_v2, %v3412_v61  ;;  %v1696_v34 = vmul.f32 %v1664_v63, %v320_v58 }
 0x1f2   :  { %1886 = vst [vmem:[#allocation2 + $0x68] sm:$0xff] %v1826_v37  ;;  %v1587_v31 = vsel %vm3644_vm13, %v2177_v41, %v1583_v39  ;;  %v1697_v40 = vmul.f32 %v1665_v23, %v321_v21  ;;  %v322_v46 = vmul.f32 0.5, %v3238_v1  ;;  %v323_v36 = vmul.f32 0.5, %v3386_v26 }
 0x1f3   :  { %v1623_v8 = vadd.f32 %v2179_v32, %v1622_v27  ;;  %v1592_v30 = vsel %vm1589_vm15, %v1591_v38, %v1587_v31 }
 0x1f4   :  { %v1714_v52 = vpack.c.bf16 %v1697_v40, %v1696_v34  ;;  %v1593_v16 = vmul.f32 %v1592_v30, %v1568_v3 }
 0x1f5   :  { %v1627_v44 = vsel %vm3652_vm14, %v2179_v32, %v1623_v8 }
 0x1f6   :  { %v1632_v0 = vsel %vm1629_vm0, %v1631_v60, %v1627_v44  ;;  %v2041_v12 = vclamps-f32 %v1593_v16, 1.0 }
 0x1f7   :  { %v1633_v62 = vmul.f32 %v1632_v0, %v1608_v4 }
 0x1f8   :  { %v1666_v24 = vadd.f32 1.0, %v2041_v12 }
 0x1f9   :  { %v2042_v45 = vclamps-f32 %v1633_v62, 1.0 }
 0x1fa   :  { %v1698_v49 = vmul.f32 %v1666_v24, %v322_v46 }
 0x1fb   :  { %v1667_v61 = vadd.f32 1.0, %v2042_v45 }
 0x1fd   :  { %v1699_v48 = vmul.f32 %v1667_v61, %v323_v36 }
 0x1fe   :  { %1862 = vmatmul.bf16.gmra.mxu2 %v1714_v52 }
 0x1ff   :  { %v1715_v50 = vpack.c.bf16 %v1699_v48, %v1698_v49 }
 0x201   :  { %v1828_v7 = vpop.f32.mrf.mxu1 }
 0x202   :  { %v1829_v43 = vadd.f32 %v3598_v51, %v1828_v7 }
 0x204   :  { %1887 = vst [vmem:[#allocation2 + $0x70] sm:$0xff] %v1829_v43 }
 0x209   :  { %v1830_v54 = vpop.f32.mrf.mxu1 }
 0x20a   :  { %v1831_v9 = vadd.f32 %v3598_v51, %v1830_v54 }
 0x20c   :  { %1888 = vst [vmem:[#allocation2 + $0x78] sm:$0xff] %v1831_v9 }
 0x20e   :  { %1867 = vmatmul.bf16.gmra.mxu2 %v1715_v50 }
 0x21c   :  { %v1833_v41 = vpop.f32.mrf.mxu2 }
 0x21d   :  { %v1834_v18 = vadd.f32 %v3598_v51, %v1833_v41 }
 0x21f   :  { %1889 = vst [vmem:[#allocation2 + $0x80] sm:$0xff] %v1834_v18 }
 0x224   :  { %v1835_v20 = vpop.f32.mrf.mxu2 }
 0x225   :  { %v1836_v1 = vadd.f32 %v3598_v51, %v1835_v20 }
 0x227   :  { %1890 = vst [vmem:[#allocation2 + $0x88] sm:$0xff] %v1836_v1 }
 0x22e   :  { %v1838_v26 = vpop.f32.mrf.mxu2 }
 0x22f   :  { %v1839_v19 = vadd.f32 %v3598_v51, %v1838_v26 }
 0x231   :  { %1891 = vst [vmem:[#allocation2 + $0x90] sm:$0xff] %v1839_v19 }
 0x236   :  { %v1840_v10 = vpop.f32.mrf.mxu2 }
 0x237   :  { %v1841_v14 = vadd.f32 %v3598_v51, %v1840_v10 }
 0x239   :  { %1892 = vst [vmem:[#allocation2 + $0x98] sm:$0xff] %v1841_v14 }
 0x240   :  { %v1843_v32 = vpop.f32.mrf.mxu2 }
 0x241   :  { %v1844_v42 = vadd.f32 %v3598_v51, %v1843_v32 }
 0x243   :  { %1893 = vst [vmem:[#allocation2 + $0xa0] sm:$0xff] %v1844_v42 }
 0x248   :  { %v1845_v53 = vpop.f32.mrf.mxu2 }
 0x249   :  { %v1846_v28 = vadd.f32 %v3598_v51, %v1845_v53 }
 0x24b   :  { %1894 = vst [vmem:[#allocation2 + $0xa8] sm:$0xff] %v1846_v28 }
 0x250   :  { %v1848_v35 = vpop.f32.mrf.mxu2 }
 0x251   :  { %v1849_v56 = vadd.f32 %v3598_v51, %v1848_v35 }
 0x253   :  { %1895 = vst [vmem:[#allocation2 + $0xb0] sm:$0xff] %v1849_v56 }
 0x258   :  { %v1850_v55 = vpop.f32.mrf.mxu2 }
 0x259   :  { %v1851_v15 = vadd.f32 %v3598_v51, %v1850_v55 }
 0x25b   :  { %1896 = vst [vmem:[#allocation2 + $0xb8] sm:$0xff] %v1851_v15 }
 0x261   :  { %v1853_v13 = vpop.f32.mrf.mxu2 }
 0x262   :  { %v1854_v25 = vadd.f32 %v3598_v51, %v1853_v13 }
 0x264   :  { %1897 = vst [vmem:[#allocation2 + $0xc0] sm:$0xff] %v1854_v25 }
 0x269   :  { %v1855_v6 = vpop.f32.mrf.mxu2 }
 0x26a   :  { %v1856_v29 = vadd.f32 %v3598_v51, %v1855_v6 }
 0x26c   :  { %1898 = vst [vmem:[#allocation2 + $0xc8] sm:$0xff] %v1856_v29 }
 0x271   :  { %v1858_v37 = vpop.f32.mrf.mxu2 }
 0x272   :  { %v1859_v47 = vadd.f32 %v3598_v51, %v1858_v37 }
 0x274   :  { %1899 = vst [vmem:[#allocation2 + $0xd0] sm:$0xff] %v1859_v47 }
 0x279   :  { %v1860_v27 = vpop.f32.mrf.mxu2 }
 0x27a   :  { %v1861_v59 = vadd.f32 %v3598_v51, %v1860_v27 }
 0x27c   :  { %1900 = vst [vmem:[#allocation2 + $0xd8] sm:$0xff] %v1861_v59 }
 0x281   :  { %v1863_v39 = vpop.f32.mrf.mxu2 }
 0x282   :  { %v1864_v11 = vadd.f32 %v3598_v51, %v1863_v39 }
 0x284   :  { %1901 = vst [vmem:[#allocation2 + $0xe0] sm:$0xff] %v1864_v11 }
 0x289   :  { %v1865_v5 = vpop.f32.mrf.mxu2 }
 0x28a   :  { %v1866_v22 = vadd.f32 %v3598_v51, %v1865_v5 }
 0x28c   :  { %1902 = vst [vmem:[#allocation2 + $0xe8] sm:$0xff] %v1866_v22 }
 0x291   :  { %v1868_v33 = vpop.f32.mrf.mxu2 }
 0x292   :  { %v1869_v58 = vadd.f32 %v3598_v51, %v1868_v33 }
 0x294   :  { %1903 = vst [vmem:[#allocation2 + $0xf0] sm:$0xff] %v1869_v58 }
 0x299   :  { %v1870_v21 = vpop.f32.mrf.mxu2 }
 0x29a   :  { %v1871_v8 = vadd.f32 %v3598_v51, %v1870_v21 }
 0x29c   :  { %1904 = vst [vmem:[#allocation2 + $0xf8] sm:$0xff] %v1871_v8 }
 0x29d   :  { %1917 = dma.vmem_to_hbm [thread:$0]  %s1910_s25, 4096, %s1912_s1, [#allocation3], %s2210_s28, %s2210_s28, %s2211_s29  }
 0x29e   :  { %2207 = dma.done.wait [#allocation3], 4096  }
 0x29f   :  { %2208 = vsyncadd [#allocation3], 4294963200 }
 0x2a0   :  { %1922 = vsyncpa [#allocation3], 1 }

</bundles_post_ra>
